<compile_context>
chip_gen: v7x
topology: tpu7x:2x2x1
jax: 0.10.0
libtpu: 0.0.40
codegen_flags: <defaults>
</compile_context>

<pallas_src>
import jax
import jax.numpy as jnp
import numpy as np
from jax.experimental import pallas as pl
from jax.experimental.pallas import tpu as pltpu

_MASK_VALUE = -1e30


# ---------------------------------------------------------------------------
# Kernel 1: fused 1x1x1 Q/K/V projections + spatial self-attention + residual,
# flash-style tiled over both the query and key axes of the N x N attention.
# ---------------------------------------------------------------------------
def sse_attention(x_flat, wqk_t, wv_g, n_valid, tq, tk):
    """x_flat: (B, C, Np) lane-dense.  Returns gamma*attn(x) + x, shape (B, C, Np)."""
    B, C, Np = x_flat.shape
    mask_needed = (n_valid != Np)

    def kernel(xq_ref, xk_ref, wqk_ref, wv_ref, out_ref, m_sc, l_sc, acc_sc, q_sc):
        ki = pl.program_id(2)

        @pl.when(ki == 0)
        def _():
            m_sc[...] = jnp.full((1, tq), -jnp.inf, jnp.float32)
            l_sc[...] = jnp.zeros((1, tq), jnp.float32)
            acc_sc[...] = jnp.zeros((C, tq), jnp.float32)
            # Project the query tile once per (b, qi): qp = (Wq^T Wk)^T @ x_q.
            q_sc[...] = jnp.dot(wqk_ref[...], xq_ref[0],
                                preferred_element_type=jnp.float32)   # (C, tq)

        x_k = xk_ref[0]                                               # (C, tk)

        # s[m, n] = energy[n, m] (key-major: softmax reduces over sublanes and
        # the PV matmul below needs no transpose of the probability tile).
        s = jax.lax.dot_general(x_k, q_sc[...], (((0,), (0,)), ((), ())),
                                preferred_element_type=jnp.float32)   # (tk, tq)

        if mask_needed:  # static: only when N was padded to a multiple of 128
            kv_ids = ki * tk + jax.lax.broadcasted_iota(jnp.int32, (tk, tq), 0)
            s = jnp.where(kv_ids < n_valid, s, _MASK_VALUE)

        m_prev = m_sc[...]                                            # (1, tq)
        m_new = jnp.maximum(m_prev, jnp.max(s, axis=0, keepdims=True))
        alpha = jnp.exp(m_prev - m_new)                               # (1, tq)
        p = jnp.exp(s - m_new)                                        # (tk, tq)

        l_sc[...] = alpha * l_sc[...] + jnp.sum(p, axis=0, keepdims=True)
        # Value projection is linear: accumulate raw x_k @ p here and apply
        # (gamma * Wv) once in the epilogue -> no projection in the inner loop.
        acc_sc[...] = alpha * acc_sc[...] + jnp.dot(
            x_k, p, preferred_element_type=jnp.float32)               # (C, tq)
        m_sc[...] = m_new

        @pl.when(ki == pl.num_programs(2) - 1)
        def _():
            inv_l = pl.reciprocal(l_sc[...], approx=True)             # (1, tq)
            o = jnp.dot(wv_ref[...], acc_sc[...] * inv_l,
                        preferred_element_type=jnp.float32)           # (C, tq)
            out_ref[0] = (o + xq_ref[0]).astype(out_ref.dtype)

    return pl.pallas_call(
        kernel,
        out_shape=jax.ShapeDtypeStruct((B, C, Np), jnp.float32),
        grid=(B, Np // tq, Np // tk),
        in_specs=[
            pl.BlockSpec((1, C, tq), lambda b, qi, ki: (b, 0, qi)),   # x (query side)
            pl.BlockSpec((1, C, tk), lambda b, qi, ki: (b, 0, ki)),   # x (key/value side)
            pl.BlockSpec((C, C), lambda b, qi, ki: (0, 0)),           # (Wq^T Wk)^T
            pl.BlockSpec((C, C), lambda b, qi, ki: (0, 0)),           # gamma * Wv
        ],
        out_specs=pl.BlockSpec((1, C, tq), lambda b, qi, ki: (b, 0, qi)),
        scratch_shapes=[
            pltpu.VMEM((1, tq), jnp.float32),    # running max
            pltpu.VMEM((1, tq), jnp.float32),    # running denominator
            pltpu.VMEM((C, tq), jnp.float32),    # output accumulator (pre-Wv)
            pltpu.VMEM((C, tq), jnp.float32),    # cached projected query tile
        ],
        compiler_params=pltpu.CompilerParams(
            dimension_semantics=("parallel", "parallel", "arbitrary")),
    )(x_flat, x_flat, wqk_t, wv_g)


# ---------------------------------------------------------------------------
# Kernel 2: id_conv = Conv3d(C, C//2, kernel=3, padding=1, bias=False), done as
# 27 shifted matmuls on the lane-dense (C, N) slab (lane rolls + boundary
# masks) — no im2col HBM round trip.  Whole flattened volume per batch element
# stays resident (tiny for these volumes).
# TODO(synk): very large volumes would need H-tiling with a halo DMA.
# ---------------------------------------------------------------------------
def sse_idconv(y_flat, w_taps, H, W, D):
    B, C, Np = y_flat.shape
    Co = w_taps.shape[1]
    WD = W * D

    def kernel(y_ref, w_ref, out_ref):
        y = y_ref[0]                                                  # (C, Np)
        n_idx = jax.lax.broadcasted_iota(jnp.int32, (1, Np), 1)
        h_idx = n_idx // WD
        w_idx = (n_idx // D) % W
        d_idx = n_idx % D
        h_ok = [(h_idx + s >= 0) & (h_idx + s < H) for s in (-1, 0, 1)]
        w_ok = [(w_idx + s >= 0) & (w_idx + s < W) for s in (-1, 0, 1)]
        d_ok = [(d_idx + s >= 0) & (d_idx + s < D) for s in (-1, 0, 1)]

        acc = jnp.zeros((Co, Np), jnp.float32)
        for kh in range(3):
            for kw in range(3):
                for kd in range(3):
                    off = (kh - 1) * WD + (kw - 1) * D + (kd - 1)
                    if off % Np:
                        shifted = pltpu.roll(y, shift=(-off) % Np, axis=1)
                    else:
                        shifted = y
                    valid = h_ok[kh] & w_ok[kw] & d_ok[kd]            # (1, Np)
                    slab = jnp.where(valid, shifted, 0.0)             # (C, Np)
                    tap = (kh * 3 + kw) * 3 + kd
                    acc = acc + jnp.dot(w_ref[tap], slab,
                                        preferred_element_type=jnp.float32)
        out_ref[0] = acc.astype(out_ref.dtype)

    return pl.pallas_call(
        kernel,
        out_shape=jax.ShapeDtypeStruct((B, Co, Np), jnp.float32),
        grid=(B,),
        in_specs=[
            pl.BlockSpec((1, C, Np), lambda b: (b, 0, 0)),
            pl.BlockSpec((27, Co, C), lambda b: (0, 0, 0)),
        ],
        out_specs=pl.BlockSpec((1, Co, Np), lambda b: (b, 0, 0)),
        compiler_params=pltpu.CompilerParams(dimension_semantics=("parallel",)),
    )(y_flat, w_taps)


# ---------------------------------------------------------------------------
# Full forward: Pallas hot paths + tiny JAX glue (reshape / pad / weight prep).
# ---------------------------------------------------------------------------
def _pick_tile(n_pad, preferred=256):
    t = min(preferred, n_pad)
    while n_pad % t:
        t -= 128
    return t


def sse_forward(x, wq, wk, wv, gamma, w_id):
    B, C, H, W, D = x.shape
    N = H * W * D
    Co = w_id.shape[0]

    # Lane-dense flattened spatial dim (multiple of 128).
    Np = ((N + 127) // 128) * 128
    x_flat = x.reshape(B, C, N)
    if Np != N:
        x_flat = jnp.pad(x_flat, ((0, 0), (0, 0), (0, Np - N)))

    # Fuse the Q/K 1x1x1 convs: energy[n,m] = x_n^T (Wq^T Wk) x_m.  The kernel
    # applies the fused matrix on the query side, so pass its transpose.
    wqk_t = jnp.dot(wk.T, wq, precision=jax.lax.Precision.HIGHEST)    # (Wq^T Wk)^T
    wv_g = gamma[0] * wv                                              # gamma folded in

    tq = _pick_tile(Np)
    tk = _pick_tile(Np)
    y = sse_attention(x_flat, wqk_t, wv_g, N, tq, tk)                 # (B, C, Np)

    w_taps = jnp.transpose(w_id, (2, 3, 4, 0, 1)).reshape(27, Co, C)  # (27, Co, C)
    out_flat = sse_idconv(y, w_taps, H, W, D)                         # (B, Co, Np)
    return out_flat[:, :, :N].reshape(B, Co, H, W, D)


# ---------------------------------------------------------------------------
# Pure-JAX reference for verification.
# ---------------------------------------------------------------------------
def sse_reference(x, wq, wk, wv, gamma, w_id):
    B, C, H, W, D = x.shape
    N = H * W * D
    hp = jax.lax.Precision.HIGHEST
    xf = x.reshape(B, C, N)
    q = jnp.einsum('oc,bcn->bon', wq, xf, precision=hp)
    k = jnp.einsum('oc,bcn->bon', wk, xf, precision=hp)
    v = jnp.einsum('oc,bcn->bon', wv, xf, precision=hp)
    energy = jnp.einsum('bcn,bcm->bnm', q, k, precision=hp)
    att = jax.nn.softmax(energy, axis=-1)
    o = jnp.einsum('bcm,bnm->bcn', v, att, precision=hp)
    y = (gamma[0] * o + xf).reshape(B, C, H, W, D)
    return jax.lax.conv_general_dilated(
        y, w_id, window_strides=(1, 1, 1),
        padding=((1, 1), (1, 1), (1, 1)),
        dimension_numbers=('NCDHW', 'OIDHW', 'NCDHW'), precision=hp)


if __name__ == "__main__":
    def run_case(key, B, C, H, W, D):
        Cq, Co = C // 8, C // 2
        k1, k2, k3, k4, k5 = jax.random.split(key, 5)
        x = jax.random.normal(k1, (B, C, H, W, D), jnp.float32)
        # Conv3d 1x1x1 weights are (out, in, 1, 1, 1); stored squeezed.
        wq = jax.random.normal(k2, (Cq, C), jnp.float32) * 0.1
        wk = jax.random.normal(k3, (Cq, C), jnp.float32) * 0.1
        wv = jax.random.normal(k4, (C, C), jnp.float32) * 0.1
        w_id = jax.random.normal(k5, (Co, C, 3, 3, 3), jnp.float32) * 0.1
        # PyTorch inits gamma to 0 (attention branch off); use a nonzero value
        # so the attention path is actually exercised.
        gamma = jnp.array([0.5], jnp.float32)

        out = jax.block_until_ready(sse_forward(x, wq, wk, wv, gamma, w_id))
        ref = sse_reference(x, wq, wk, wv, gamma, w_id)
        np.testing.assert_allclose(np.asarray(out), np.asarray(ref),
                                   rtol=2e-3, atol=2e-3)

    key = jax.random.PRNGKey(0)
    k_a, k_b = jax.random.split(key)
    run_case(k_a, B=2, C=16, H=8, W=8, D=8)   # N=512: multi-tile flash path
    run_case(k_b, B=1, C=16, H=4, W=4, D=4)   # N=64 -> padded to 128: mask path
    print("KERNEL_OK")
</pallas_src>

<mosaic_0001>
module attributes {stable_mosaic.version = 11 : i64} {
  func.func @kernel(%arg0: i32, %arg1: i32, %arg2: i32, %arg3: memref<1x16x256xf32, #tpu.memory_space<vmem>>, %arg4: memref<1x16x256xf32, #tpu.memory_space<vmem>>, %arg5: memref<16x16xf32, #tpu.memory_space<vmem>>, %arg6: memref<16x16xf32, #tpu.memory_space<vmem>>, %arg7: memref<1x16x256xf32, #tpu.memory_space<vmem>>, %arg8: memref<1x256xf32, #tpu.memory_space<vmem>>, %arg9: memref<1x256xf32, #tpu.memory_space<vmem>>, %arg10: memref<16x256xf32, #tpu.memory_space<vmem>>, %arg11: memref<16x256xf32, #tpu.memory_space<vmem>>) attributes {dimension_semantics = [#tpu.dimension_semantics<parallel>, #tpu.dimension_semantics<parallel>, #tpu.dimension_semantics<arbitrary>], iteration_bounds = array<i64: 2, 2, 2>, scalar_prefetch = 0 : i64, scratch_operands = 4 : i64, tpu.core_type = #tpu.core_type<tc>, window_params = [{transform_indices = @transform_0, window_bounds = array<i64: 1, 16, 256>}, {transform_indices = @transform_1, window_bounds = array<i64: 1, 16, 256>}, {pipeline_mode = #tpu.pipeline_mode<synchronous>, transform_indices = @transform_2, window_bounds = array<i64: 16, 16>}, {pipeline_mode = #tpu.pipeline_mode<synchronous>, transform_indices = @transform_3, window_bounds = array<i64: 16, 16>}, {transform_indices = @transform_4, window_bounds = array<i64: 1, 16, 256>}]} {
    %c0_i32 = arith.constant 0 : i32
    %0 = arith.cmpi eq, %arg2, %c0_i32 : i32
    %1 = arith.extui %0 : i1 to i32
    %c0_i32_0 = arith.constant 0 : i32
    %2 = arith.cmpi ne, %1, %c0_i32_0 : i32
    scf.if %2 {
      %cst_21 = arith.constant 0xFF800000 : f32
      %32 = vector.broadcast %cst_21 : f32 to vector<1x256xf32>
      %c0_22 = arith.constant 0 : index
      %c0_23 = arith.constant 0 : index
      %33 = vector.load %arg8[%c0_22, %c0_23] : memref<1x256xf32, #tpu.memory_space<vmem>>, vector<1x256xf32>
      tpu.vector_store %arg8[%c0_22, %c0_23], %32 {strides = array<i32>} : memref<1x256xf32, #tpu.memory_space<vmem>>, vector<1x256xf32>,
      %cst_24 = arith.constant 0.000000e+00 : f32
      %34 = vector.broadcast %cst_24 : f32 to vector<1x256xf32>
      %c0_25 = arith.constant 0 : index
      %c0_26 = arith.constant 0 : index
      %35 = vector.load %arg9[%c0_25, %c0_26] : memref<1x256xf32, #tpu.memory_space<vmem>>, vector<1x256xf32>
      tpu.vector_store %arg9[%c0_25, %c0_26], %34 {strides = array<i32>} : memref<1x256xf32, #tpu.memory_space<vmem>>, vector<1x256xf32>,
      %cst_27 = arith.constant 0.000000e+00 : f32
      %36 = vector.broadcast %cst_27 : f32 to vector<16x256xf32>
      %c0_28 = arith.constant 0 : index
      %c0_29 = arith.constant 0 : index
      %37 = vector.load %arg10[%c0_28, %c0_29] : memref<16x256xf32, #tpu.memory_space<vmem>>, vector<16x256xf32>
      tpu.vector_store %arg10[%c0_28, %c0_29], %36 {strides = array<i32>} : memref<16x256xf32, #tpu.memory_space<vmem>>, vector<16x256xf32>,
      %c0_30 = arith.constant 0 : index
      %c0_31 = arith.constant 0 : index
      %38 = vector.load %arg5[%c0_30, %c0_31] : memref<16x16xf32, #tpu.memory_space<vmem>>, vector<16x16xf32>
      %c0_32 = arith.constant 0 : index
      %c0_33 = arith.constant 0 : index
      %c0_34 = arith.constant 0 : index
      %39 = vector.load %arg3[%c0_32, %c0_33, %c0_34] : memref<1x16x256xf32, #tpu.memory_space<vmem>>, vector<1x16x256xf32>
      %40 = vector.shape_cast %39 : vector<1x16x256xf32> to vector<16x256xf32>
      %cst_35 = arith.constant dense<0.000000e+00> : vector<16x256xf32>
      %41 = tpu.matmul %38, %40, %cst_35 {dimension_numbers = #tpu.dot_dimension_numbers<[1], [0], [0], [1], [0, 0, 1, 1], [], []>} : vector<16x16xf32>, vector<16x256xf32>, vector<16x256xf32> -> vector<16x256xf32>
      %c0_36 = arith.constant 0 : index
      %c0_37 = arith.constant 0 : index
      %42 = vector.load %arg11[%c0_36, %c0_37] : memref<16x256xf32, #tpu.memory_space<vmem>>, vector<16x256xf32>
      tpu.vector_store %arg11[%c0_36, %c0_37], %41 {strides = array<i32>} : memref<16x256xf32, #tpu.memory_space<vmem>>, vector<16x256xf32>,
    } else {
    }
    %c0 = arith.constant 0 : index
    %c0_1 = arith.constant 0 : index
    %c0_2 = arith.constant 0 : index
    %3 = vector.load %arg4[%c0, %c0_1, %c0_2] : memref<1x16x256xf32, #tpu.memory_space<vmem>>, vector<1x16x256xf32>
    %4 = vector.shape_cast %3 : vector<1x16x256xf32> to vector<16x256xf32>
    %c0_3 = arith.constant 0 : index
    %c0_4 = arith.constant 0 : index
    %5 = vector.load %arg11[%c0_3, %c0_4] : memref<16x256xf32, #tpu.memory_space<vmem>>, vector<16x256xf32>
    %cst = arith.constant dense<0.000000e+00> : vector<256x256xf32>
    %6 = tpu.matmul %4, %5, %cst {dimension_numbers = #tpu.dot_dimension_numbers<[0], [0], [1], [1], [0, 1, 1, 1], [], []>} : vector<16x256xf32>, vector<16x256xf32>, vector<256x256xf32> -> vector<256x256xf32>
    %c0_5 = arith.constant 0 : index
    %c0_6 = arith.constant 0 : index
    %7 = vector.load %arg8[%c0_5, %c0_6] : memref<1x256xf32, #tpu.memory_space<vmem>>, vector<1x256xf32>
    %cst_7 = arith.constant dense<0xFF800000> : vector<256xf32>
    %8 = vector.multi_reduction <maximumf>, %6, %cst_7 [0] : vector<256x256xf32> to vector<256xf32>
    %9 = vector.shape_cast %8 : vector<256xf32> to vector<1x256xf32>
    %10 = arith.maximumf %7, %9 : vector<1x256xf32>
    %11 = arith.subf %7, %10 : vector<1x256xf32>
    %12 = math.exp %11 : vector<1x256xf32>
    %13 = vector.broadcast %10 : vector<1x256xf32> to vector<256x256xf32>
    %14 = arith.subf %6, %13 : vector<256x256xf32>
    %15 = math.exp %14 : vector<256x256xf32>
    %c0_8 = arith.constant 0 : index
    %c0_9 = arith.constant 0 : index
    %16 = vector.load %arg9[%c0_8, %c0_9] : memref<1x256xf32, #tpu.memory_space<vmem>>, vector<1x256xf32>
    %17 = arith.mulf %12, %16 : vector<1x256xf32>
    %cst_10 = arith.constant dense<0.000000e+00> : vector<256xf32>
    %18 = vector.multi_reduction <add>, %15, %cst_10 [0] : vector<256x256xf32> to vector<256xf32>
    %19 = vector.shape_cast %18 : vector<256xf32> to vector<1x256xf32>
    %20 = arith.addf %17, %19 : vector<1x256xf32>
    %c0_11 = arith.constant 0 : index
    %c0_12 = arith.constant 0 : index
    %21 = vector.load %arg9[%c0_11, %c0_12] : memref<1x256xf32, #tpu.memory_space<vmem>>, vector<1x256xf32>
    tpu.vector_store %arg9[%c0_11, %c0_12], %20 {strides = array<i32>} : memref<1x256xf32, #tpu.memory_space<vmem>>, vector<1x256xf32>,
    %c0_13 = arith.constant 0 : index
    %c0_14 = arith.constant 0 : index
    %22 = vector.load %arg10[%c0_13, %c0_14] : memref<16x256xf32, #tpu.memory_space<vmem>>, vector<16x256xf32>
    %23 = vector.broadcast %12 : vector<1x256xf32> to vector<16x256xf32>
    %24 = arith.mulf %23, %22 : vector<16x256xf32>
    %cst_15 = arith.constant dense<0.000000e+00> : vector<16x256xf32>
    %25 = tpu.matmul %4, %15, %cst_15 {dimension_numbers = #tpu.dot_dimension_numbers<[1], [0], [0], [1], [0, 0, 1, 1], [], []>} : vector<16x256xf32>, vector<256x256xf32>, vector<16x256xf32> -> vector<16x256xf32>
    %26 = arith.addf %24, %25 : vector<16x256xf32>
    %c0_16 = arith.constant 0 : index
    %c0_17 = arith.constant 0 : index
    %27 = vector.load %arg10[%c0_16, %c0_17] : memref<16x256xf32, #tpu.memory_space<vmem>>, vector<16x256xf32>
    tpu.vector_store %arg10[%c0_16, %c0_17], %26 {strides = array<i32>} : memref<16x256xf32, #tpu.memory_space<vmem>>, vector<16x256xf32>,
    %c0_18 = arith.constant 0 : index
    %c0_19 = arith.constant 0 : index
    %28 = vector.load %arg8[%c0_18, %c0_19] : memref<1x256xf32, #tpu.memory_space<vmem>>, vector<1x256xf32>
    tpu.vector_store %arg8[%c0_18, %c0_19], %10 {strides = array<i32>} : memref<1x256xf32, #tpu.memory_space<vmem>>, vector<1x256xf32>,
    %c1_i32 = arith.constant 1 : i32
    %29 = arith.cmpi eq, %arg2, %c1_i32 : i32
    %30 = arith.extui %29 : i1 to i32
    %c0_i32_20 = arith.constant 0 : i32
    %31 = arith.cmpi ne, %30, %c0_i32_20 : i32
    scf.if %31 {
      %c0_21 = arith.constant 0 : index
      %c0_22 = arith.constant 0 : index
      %32 = vector.load %arg9[%c0_21, %c0_22] : memref<1x256xf32, #tpu.memory_space<vmem>>, vector<1x256xf32>
      %33 = tpu.reciprocal %32 {approx = true} : vector<1x256xf32> -> vector<1x256xf32>
      %c0_23 = arith.constant 0 : index
      %c0_24 = arith.constant 0 : index
      %34 = vector.load %arg6[%c0_23, %c0_24] : memref<16x16xf32, #tpu.memory_space<vmem>>, vector<16x16xf32>
      %c0_25 = arith.constant 0 : index
      %c0_26 = arith.constant 0 : index
      %35 = vector.load %arg10[%c0_25, %c0_26] : memref<16x256xf32, #tpu.memory_space<vmem>>, vector<16x256xf32>
      %36 = vector.broadcast %33 : vector<1x256xf32> to vector<16x256xf32>
      %37 = arith.mulf %35, %36 : vector<16x256xf32>
      %cst_27 = arith.constant dense<0.000000e+00> : vector<16x256xf32>
      %38 = tpu.matmul %34, %37, %cst_27 {dimension_numbers = #tpu.dot_dimension_numbers<[1], [0], [0], [1], [0, 0, 1, 1], [], []>} : vector<16x16xf32>, vector<16x256xf32>, vector<16x256xf32> -> vector<16x256xf32>
      %c0_28 = arith.constant 0 : index
      %c0_29 = arith.constant 0 : index
      %c0_30 = arith.constant 0 : index
      %39 = vector.load %arg3[%c0_28, %c0_29, %c0_30] : memref<1x16x256xf32, #tpu.memory_space<vmem>>, vector<1x16x256xf32>
      %40 = vector.shape_cast %39 : vector<1x16x256xf32> to vector<16x256xf32>
      %41 = arith.addf %38, %40 : vector<16x256xf32>
      %c0_31 = arith.constant 0 : index
      %c0_32 = arith.constant 0 : index
      %c0_33 = arith.constant 0 : index
      %42 = vector.load %arg7[%c0_31, %c0_32, %c0_33] : memref<1x16x256xf32, #tpu.memory_space<vmem>>, vector<1x16x256xf32>
      %43 = vector.shape_cast %42 : vector<1x16x256xf32> to vector<16x256xf32>
      %44 = vector.shape_cast %41 : vector<16x256xf32> to vector<1x16x256xf32>
      tpu.vector_store %arg7[%c0_31, %c0_32, %c0_33], %44 {strides = array<i32>} : memref<1x16x256xf32, #tpu.memory_space<vmem>>, vector<1x16x256xf32>,
    } else {
    }
    return
  }
  func.func @transform_0(%arg0: i32, %arg1: i32, %arg2: i32) -> (i32, i32, i32) {
    %c0_i32 = arith.constant 0 : i32
    %c0_i32_0 = arith.constant 0 : i32
    return %arg0, %c0_i32, %arg1 : i32, i32, i32
  }
  func.func @transform_1(%arg0: i32, %arg1: i32, %arg2: i32) -> (i32, i32, i32) {
    %c0_i32 = arith.constant 0 : i32
    %c0_i32_0 = arith.constant 0 : i32
    return %arg0, %c0_i32, %arg2 : i32, i32, i32
  }
  func.func @transform_2(%arg0: i32, %arg1: i32, %arg2: i32) -> (i32, i32) {
    %c0_i32 = arith.constant 0 : i32
    %c0_i32_0 = arith.constant 0 : i32
    %c0_i32_1 = arith.constant 0 : i32
    return %c0_i32, %c0_i32_0 : i32, i32
  }
  func.func @transform_3(%arg0: i32, %arg1: i32, %arg2: i32) -> (i32, i32) {
    %c0_i32 = arith.constant 0 : i32
    %c0_i32_0 = arith.constant 0 : i32
    %c0_i32_1 = arith.constant 0 : i32
    return %c0_i32, %c0_i32_0 : i32, i32
  }
  func.func @transform_4(%arg0: i32, %arg1: i32, %arg2: i32) -> (i32, i32, i32) {
    %c0_i32 = arith.constant 0 : i32
    %c0_i32_0 = arith.constant 0 : i32
    return %arg0, %c0_i32, %arg1 : i32, i32, i32
  }
}

</mosaic_0001>

<bundles_post_ra>
// kernel: tpu_custom_call.1
= control target key start
LH: loop header
LB: loop body
LE: loop exit
PB: predicated region body
PF: predicated region fallthrough
CT: control target
= control target key end

     0   :  { %s3467_s0 = inlined_call_operand.hbm [shape: f32[2,16,512], index: 0, kind: input, shape index: {}]   ;;  %s3468_s1 = inlined_call_operand.hbm [shape: f32[2,16,512], index: 1, kind: input, shape index: {}]   ;;  %s3469_s2 = inlined_call_operand.hbm [shape: f32[16,16], index: 2, kind: input, shape index: {}]   ;;  %s3470_s3 = inlined_call_operand.hbm [shape: f32[16,16], index: 3, kind: input, shape index: {}]   ;;  %s3471_s4 = inlined_call_operand.hbm [shape: f32[2,16,512], index: 4, kind: output, shape index: {}]  }
   0x1   :  { %3547 = sst [smem:[#allocation61_spill]] %s3469_s2 }
   0x2   :  { %3548 = sst [smem:[#allocation62_spill]] %s3470_s3 }
   0x3   :  { %3549 = sst [smem:[#allocation63_spill]] %s3471_s4 }
   0x4   :  { %9 = vsyncpa [#allocation7], 0 }
   0x5   :  { %11 = vsyncpa [#allocation7 + $0x1], 0 }
   0x6   :  { %12 = vsyncpa [#allocation10], 0 }
   0x7   :  { %14 = vsyncpa [#allocation10 + $0x1], 0 }
   0x8   :  { %15 = vsyncpa [#allocation13], 0 }
   0x9   :  { %16 = vsyncpa [#allocation8], 0 }
   0xa   :  { %18 = vsyncpa [#allocation8 + $0x1], 0  ;;  %s2378_s15 = smov 0   ;;  %s2380_s16 = smov 0  }
   0xb   :  { %s2382_s17 = smov 0   ;;  %s2384_s18 = smov 0  }
   0xc   :  { %s2386_s19 = smov 0   ;;  %s2388_s20 = smov 0  }
   0xd   :  { %s2390_s21 = smov 0   ;;  %s2392_s22 = smov 0  }
   0xe   :  { %s2394_s23 = smov 0   ;;  %s2396_s24 = smov 0  }
   0xf   :  { %s2398_s25 = smov 0   ;;  %s2400_s26 = smov 0  }
  0x10   :  { %s2402_s27 = smov 0  }
  0x11 LB: > { %3550 = sst [smem:[#allocation20_spill]] %s2289_s16  ;;  %s2442_s28 = sadd.s32 4294967295, %s2333_s27   ;;  %s2333_s27 = sphi %s2402_s27, %s24_s27   ;;  %s2329_s26 = sphi %s2400_s26, %s3752_s26   ;;  %s2325_s25 = sphi %s2398_s25, %s3751_s25   ;;  %s2321_s24 = sphi %s2396_s24, %s3750_s24   ;;  %s2317_s23 = sphi %s2394_s23, %s3749_s23   ;;  %s2313_s22 = sphi %s2392_s22, %s3739_s22   ;;  %s2309_s21 = sphi %s2390_s21, %s3748_s21   ;;  %s2305_s20 = sphi %s2388_s20, %s3747_s20   ;;  %s2301_s19 = sphi %s2386_s19, %s3746_s19   ;;  %s2297_s18 = sphi %s2384_s18, %s3737_s18   ;;  %s2293_s17 = sphi %s2382_s17, %s3745_s17   ;;  %s2289_s16 = sphi %s2380_s16, %s3744_s16   ;;  %s2285_s15 = sphi %s2378_s15, %s3743_s15  }
  0x12   : > { %3551 = sst [smem:[#allocation21_spill]] %s2297_s18  ;;  %s1632_s29 = sadd.s32 4294967294, %s2333_s27  }
  0x13   : > { %3552 = sst [smem:[#allocation22_spill]] %s2301_s19  ;;  %p3476_p0 = scmp.eq.s32.totalorder %s2333_s27, 0 }
  0x14   : > { %3553 = sst [smem:[#allocation23_spill]] %s2309_s21  ;;  %p65_p1 = scmp.ne.s32.totalorder %s2301_s19, %s2297_s18 }
  0x15   : > { %3554 = sst [smem:[#allocation24_spill]] %s2313_s22  ;;  %p3472_p2 = scmp.eq.s32.totalorder %s2442_s28, 0 }
  0x16   : > { %3555 = sst [smem:[#allocation25_spill]] %s2317_s23  ;;  %p87_p3 = scmp.ne.s32.totalorder %s2293_s17, %s2289_s16 }
  0x17   : > { %3556 = sst [smem:[#allocation26_spill]] %s2325_s25  ;;  %p93_p4 = scmp.ne.s32.totalorder %s2289_s16, %s2285_s15 }
  0x18   : > { %3557 = sst [smem:[#allocation27_spill]] %s2442_s28  ;;  %p2455_p6 = por %p3472_p2, %p65_p1 }
  0x19   : > { %p2461_p7 = por %p87_p3, %p3476_p0  ;;  %p2467_p8 = por %p93_p4, %p3472_p2 }
  0x1a   : > { %s3558_s30 = scalar_select %p2455_p6, 1, 0 }
  0x1b   : > { %s3561_s6 = scalar_select %p2467_p8, 1, 0 }
  0x1c   : > { %3559 = sst [smem:[#allocation28_spill]] %s3558_s30  ;;  %p167_p9 = scmp.eq.s32.totalorder %s1632_s29, 7 }
  0x1d   : > { %3562 = sst [smem:[#allocation29_spill]] %s3561_s6  ;;  %p1633_p10 = scmp.ge.s32.totalorder %s2333_s27, 1 }
  0x1e   : > { %p174_p11 = scmp.lt.s32.totalorder %s2333_s27, 9  ;;  %p2473_p12 = por %p167_p9, %p65_p1 }
  0x1f   : > { %s2335_s9 = smov [#allocation11]   ;;  %p3474_p1 = scmp.lt.s32.totalorder %s2333_s27, 8 }
  0x20   : > { %s3563_s7 = scalar_select %p2473_p12, 1, 0 }
  0x21   : > { %p2477_p13 = pnand %p1633_p10, %p174_p11  ;;  %s186_s10 = sshll.u32 %s2335_s9, 4  ;;  %s187_s10 = int_to_ptr.vmem [resolvable:$true] %s186_s10 }
  0x22   : > { %3564 = sst [smem:[#allocation30_spill]] %s3563_s7  ;;  %p2494_p9 = pnand %p3474_p1, %p2461_p7 }
  0x23   : > { %s3565_s8 = scalar_select %p2477_p13, 1, 0 }
  0x24   : > { %p1789_p3 = pneg %p2477_p13  ;;  %s3568_s2 = sld [smem:[#allocation61_spill]] }
  0x25   : > { %s3567_s12 = scalar_select %p2494_p9, 1, 0 }
  0x26   : > { %p2485_p4 = pnand %p1789_p3, %p3472_p2 }
  0x28   : > { %p2069_p11 = pneg %p2485_p4 }
  0x2a   : > { %s2067_s15 = scalar_lea.hbm %s3568_s2, 256 }
  0x2b   : > { %p2068_p10 = scmp.ne.s32.totalorder %s3568_s2, %s2067_s15  ;;  %p2074_p7 = scmp.lt.u32.totalorder %s2067_s15, %s3568_s2 }
  0x2d   : > { %p2070_p3 = pnand %p2069_p11, %p2068_p10 }
  0x2f   : > { %p2071_p2 = pneg %p2070_p3 }
  0x31   : > { %p2076_p1 = pnand %p2074_p7, %p2071_p2 }
  0x33   : > { %2079 = shalt.err (!%p2076_p1)
}
  0x34   : > { %s2080_s18 = scalar_lea.vmem %s187_s10, 256  ;;  %p2088_p8 = scmp.lt.s32.totalorder %s187_s10, %s187_s10 }
  0x35   : > { %p2081_p5 = scmp.ne.s32.totalorder %s187_s10, %s2080_s18  ;;  %p2089_p6 = scmp.lt.s32.totalorder %s2080_s18, %s2080_s18 }
  0x37   : > { %p2083_p0 = pnand %p2081_p5, %p2069_p11  ;;  %p2090_p13 = por %p2089_p6, %p2088_p8 }
  0x39   : > { %p2084_p12 = pneg %p2083_p0 }
  0x3b   : > { %p2091_p9 = pnand %p2090_p13, %p2084_p12 }
  0x3d   : > { %2094 = shalt.err (!%p2091_p9)
}
  0x3e   : > { %s2336_s13 = smov 128   ;;  %s2337_s14 = smov 8  }
  0x3f   : > { %1792 = dma.hbm_to_vmem [thread:$0]  (!%p2485_p4), %s3568_s2, 256, %s187_s10, [#allocation10], %s2336_s13, %s2336_s13, %s2337_s14  }
  0x40   : > { %s2338_s29 = smov [#allocation12]   ;;  %s3569_s3 = sld [smem:[#allocation62_spill]] }
  0x41   : > { %s199_s9 = sshll.u32 %s2338_s29, 4  ;;  %s200_s9 = int_to_ptr.vmem [resolvable:$true] %s199_s9 }
  0x46   : > { %s2095_s23 = scalar_lea.hbm %s3569_s3, 256 }
  0x47   : > { %p2096_p0 = scmp.ne.s32.totalorder %s3569_s3, %s2095_s23  ;;  %p2102_p6 = scmp.lt.u32.totalorder %s2095_s23, %s3569_s3 }
  0x49   : > { %p2098_p2 = pnand %p2096_p0, %p2069_p11 }
  0x4b   : > { %p2099_p5 = pneg %p2098_p2 }
  0x4d   : > { %p2104_p8 = pnand %p2102_p6, %p2099_p5 }
  0x4f   : > { %2107 = shalt.err (!%p2104_p8)
}
  0x50   : > { %s2108_s10 = scalar_lea.vmem %s200_s9, 256  ;;  %p2116_p9 = scmp.lt.s32.totalorder %s200_s9, %s200_s9 }
  0x51   : > { %p2109_p12 = scmp.ne.s32.totalorder %s200_s9, %s2108_s10  ;;  %p2117_p10 = scmp.lt.s32.totalorder %s2108_s10, %s2108_s10 }
  0x53   : > { %p2111_p13 = pnand %p2109_p12, %p2069_p11  ;;  %p2118_p3 = por %p2117_p10, %p2116_p9 }
  0x55   : > { %p2112_p1 = pneg %p2111_p13 }
  0x57   : > { %p2119_p7 = pnand %p2118_p3, %p2112_p1 }
  0x59   : > { %2122 = shalt.err (!%p2119_p7)
}
  0x5a   : > { %1795 = dma.hbm_to_vmem [thread:$0]  (!%p2485_p4), %s3569_s3, 256, %s200_s9, [#allocation13], %s2336_s13, %s2336_s13, %s2337_s14  }
  0x5b   : > { %s36_s21 = sadd.s32 1, %s2321_s24  ;;  %s39_s23 = sadd.s32 1, %s2325_s25 }
  0x5c   : > { %p37_p11 = scmp.ge.s32.totalorder %s36_s21, 2  ;;  %s43_s6 = sadd.s32 1, %s2329_s26 }
  0x5d   : > { %s52_s11 = sadd.s32 1, %s2305_s20  ;;  %p59_p0 = scmp.ne.s32.totalorder %s2305_s20, %s2301_s19 }
  0x5e   : > { %s3754_s21 = smov (%p37_p11, %s36_s21), 0  ;;  %s3756_s23 = smov (!%p37_p11, %s39_s23), %s2325_s25 }
  0x5f   : > { %3570 = sst [smem:[#allocation31_spill]] %s3754_s21  ;;  %p3571_p2 = scmp.eq.s32.totalorder %s2333_s27, 0 }
  0x60   : > { %s76_s13 = ssub.s32 %s2321_s24, %s3754_s21  ;;  %p41_p4 = scmp.ge.s32.totalorder %s3756_s23, 2 }
  0x61   : > { %p2551_p5 = por %p3571_p2, %p59_p0  ;;  %s80_s14 = sadd.s32 1, %s2293_s17 }
  0x62   : > { %p3573_p6 = scmp.eq.s32.totalorder %s2442_s28, 7  ;;  %s213_s29 = sand.u32 1, %s2305_s20  }
  0x63   : > { %s3758_s23 = smov (%p41_p4, %s3756_s23), 0  ;;  %s3760_s6 = smov (!%p41_p4, %s43_s6), %s2329_s26 }
  0x64   : > { %p2560_p8 = por %p3573_p6, %p59_p0  ;;  %3576 = sst [smem:[#allocation33_spill]] %s3758_s23 }
  0x65   : > { %s48_s9 = ssub.s32 %s2325_s25, %s3758_s23  ;;  %p45_p12 = scmp.ge.s32.totalorder %s3760_s6, 2 }
  0x66   : > { %s3574_s15 = scalar_select %p2560_p8, 1, 0 }
  0x67   : > { %s1637_s5 = sshll.u32 %s213_s29, 5  ;;  %s1638_s18 = sshll.u32 %s2325_s25, 1 }
  0x68   : > { %3575 = sst [smem:[#allocation32_spill]] %s3574_s15  ;;  %s3762_s6 = smov (%p45_p12, %s3760_s6), 0 }
  0x69   : > { %s1639_s10 = sshll.u32 %s2329_s26, 3  ;;  %s217_s4 = scalar_lea.vmem [#allocation6], %s1637_s5 }
  0x6a   : > { %s226_s22 = sshll.u32 %s217_s4, 4  ;;  %s47_s2 = ssub.s32 %s2329_s26, %s3762_s6  ;;  %s2578_s22 = int_to_ptr.vmem [resolvable:$true] %s226_s22 }
  0x6b   : > { %s223_s3 = sadd.s32 %s1639_s10, %s1638_s18  ;;  %s49_s21 = sor.u32 %s48_s9, %s47_s2 }
  0x6c   : > { %s77_s15 = sor.u32 %s76_s13, %s47_s2  ;;  %p50_p13 = scmp.eq.s32.totalorder %s49_s21, 0 }
  0x6d   : > { %p78_p1 = scmp.eq.s32.totalorder %s77_s15, 0  ;;  %s1640_s23 = sshll.u32 %s223_s3, 7 }
  0x6e   : > { %s2581_s16 = scalar_select %p50_p13, %s2305_s20, %s52_s11  }
  0x6f   : > { %s2584_s25 = scalar_select %p78_p1, %s2293_s17, %s80_s14  }
  0x70   : > { %s2589_s19 = scalar_lea.hbm %s3467_s0, %s1640_s23  ;;  %p3577_p9 = scmp.lt.s32.totalorder %s2333_s27, 8 }
  0x71   : > { %s2599_s3 = scalar_lea.sflag [#allocation7], %s213_s29  ;;  %s2123_s21 = scalar_lea.hbm %s2589_s19, 512 }
  0x72   : > { %p2595_p10 = pnand %p3577_p9, %p2551_p5  ;;  %p2124_p3 = scmp.ne.s32.totalorder %s2589_s19, %s2123_s21 }
  0x73   : > { %s2128_s23 = scalar_lea.hbm %s3467_s0, 2048  ;;  %p2129_p2 = scmp.lt.u32.totalorder %s2589_s19, %s3467_s0 }
  0x74   : > { %p2125_p7 = pneg %p2595_p10  ;;  %p2130_p5 = scmp.lt.u32.totalorder %s2128_s23, %s2123_s21 }
  0x75   : > { %p2132_p6 = scmp.lt.u32.totalorder %s2123_s21, %s2589_s19 }
  0x76   : > { %p2126_p11 = pnand %p2125_p7, %p2124_p3  ;;  %p2131_p4 = por %p2130_p5, %p2129_p2 }
  0x78   : > { %p2127_p0 = pneg %p2126_p11  ;;  %p2133_p12 = por %p2132_p6, %p2131_p4 }
  0x7a   : > { %p2134_p13 = pnand %p2133_p12, %p2127_p0 }
  0x7c   : > { %2137 = shalt.err (!%p2134_p13)
}
  0x7d   : > { %s2138_s13 = scalar_lea.vmem %s2578_s22, 512  ;;  %s2339_s14 = smov [#allocation6]  }
  0x7e   : > { %p2139_p1 = scmp.ne.s32.totalorder %s2578_s22, %s2138_s13  ;;  %s2143_s15 = sshll.u32 %s2339_s14, 4  ;;  %s2144_s15 = int_to_ptr.vmem [resolvable:$false] %s2143_s15 }
  0x7f   : > { %s2145_s29 = scalar_lea.vmem %s2144_s15, 1024  ;;  %p2146_p11 = scmp.lt.s32.totalorder %s2578_s22, %s2144_s15 }
  0x80   : > { %p2141_p9 = pnand %p2139_p1, %p2125_p7  ;;  %p2147_p2 = scmp.lt.s32.totalorder %s2145_s29, %s2138_s13 }
  0x82   : > { %p2142_p3 = pneg %p2141_p9  ;;  %p2148_p5 = por %p2147_p2, %p2146_p11 }
  0x84   : > { %p2149_p4 = pnand %p2148_p5, %p2142_p3 }
  0x86   : > { %2152 = shalt.err (!%p2149_p4)
}
  0x87   : > { %s2340_s9 = smov 512   ;;  %s2341_s5 = smov 256  }
  0x88   : > { %s2342_s18 = smov 16   ;;  %s1642_s4 = sshll.u32 %s2321_s24, 1 }
  0x89   : > { %1799 = dma.hbm_to_vmem [thread:$0]  (!%p2595_p10), %s2589_s19, 512, %s2578_s22, %s2599_s3, %s2340_s9, %s2341_s5, %s2342_s18  }
  0x8a   : > { %s236_s21 = sand.u32 1, %s2333_s27   ;;  %s246_s28 = sadd.s32 %s1642_s4, %s1639_s10 }
  0x8b   : > { %s1644_s30 = sshll.u32 %s246_s28, 7  ;;  %s238_s23 = sand.u32 1, %s2293_s17  }
  0x8c   : > { %s1641_s11 = sshll.u32 %s238_s23, 5  ;;  %s2638_s14 = scalar_lea.hbm %s3468_s1, %s1644_s30 }
  0x8d   : > { %s240_s2 = scalar_lea.vmem [#allocation9], %s1641_s11  ;;  %s2642_s19 = scalar_lea.sflag [#allocation10], %s236_s21 }
  0x8e   : > { %s249_s15 = sshll.u32 %s240_s2, 4  ;;  %s2153_s22 = scalar_lea.hbm %s2638_s14, 512  ;;  %s2640_s15 = int_to_ptr.vmem [resolvable:$true] %s249_s15 }
  0x8f   : > { %p2154_p10 = scmp.ne.s32.totalorder %s2638_s14, %s2153_s22  ;;  %p3579_p7 = scmp.ne.s32.totalorder %s3567_s12, 0 }
  0x90   : > { %s2158_s29 = scalar_lea.hbm %s3468_s1, 2048  ;;  %p2159_p13 = scmp.lt.u32.totalorder %s2638_s14, %s3468_s1 }
  0x91   : > { %p2155_p0 = pneg %p3579_p7  ;;  %p2160_p1 = scmp.lt.u32.totalorder %s2158_s29, %s2153_s22 }
  0x92   : > { %p2162_p3 = scmp.lt.u32.totalorder %s2153_s22, %s2638_s14 }
  0x93   : > { %p2156_p6 = pnand %p2155_p0, %p2154_p10  ;;  %p2161_p9 = por %p2160_p1, %p2159_p13 }
  0x95   : > { %p2157_p12 = pneg %p2156_p6  ;;  %p2163_p11 = por %p2162_p3, %p2161_p9 }
  0x97   : > { %p2164_p2 = pnand %p2163_p11, %p2157_p12 }
  0x99   : > { %2167 = shalt.err (!%p2164_p2)
}
  0x9a   : > { %s2168_s21 = scalar_lea.vmem %s2640_s15, 512  ;;  %s2343_s30 = smov [#allocation9]  }
  0x9b   : > { %p2169_p5 = scmp.ne.s32.totalorder %s2640_s15, %s2168_s21  ;;  %s2173_s23 = sshll.u32 %s2343_s30, 4  ;;  %s2174_s23 = int_to_ptr.vmem [resolvable:$false] %s2173_s23 }
  0x9c   : > { %s2175_s11 = scalar_lea.vmem %s2174_s23, 1024  ;;  %p2176_p6 = scmp.lt.s32.totalorder %s2640_s15, %s2174_s23 }
  0x9d   : > { %p2171_p4 = pnand %p2169_p5, %p2155_p0  ;;  %p2177_p13 = scmp.lt.s32.totalorder %s2175_s11, %s2168_s21 }
  0x9f   : > { %p2172_p10 = pneg %p2171_p4  ;;  %p2178_p1 = por %p2177_p13, %p2176_p6 }
  0xa1   : > { %p2179_p9 = pnand %p2178_p1, %p2172_p10 }
  0xa3   : > { %2182 = shalt.err (!%p2179_p9)
}
  0xa4   : > { %1802 = dma.hbm_to_vmem [thread:$0]  (!%p3579_p7), %s2638_s14, 512, %s2640_s15, %s2642_s19, %s2340_s9, %s2341_s5, %s2342_s18  }
  0xa5   : > { %p3580_p0 = scmp.ne.s32.totalorder %s3565_s8, 0 }
  0xa7   : > { %261 = sbr.rel (%p3580_p0) target bundleno = 1489 (0x5d1), region = 36 }
  0xae   : > { %s3581_s7 = sld [smem:[#allocation22_spill]]  ;;  %s3582_s13 = sld [smem:[#allocation28_spill]] }
  0xb4   : > { %s2676_s2 = sand.u32 1, %s3581_s7   ;;  %p3583_p12 = scmp.ne.s32.totalorder %s3582_s13, 0 }
  0xb5   : > { %s1646_s22 = sshll.u32 %s2676_s2, 5  ;;  %s264_s10 = scalar_lea.sflag [#allocation7], %s2676_s2 }
  0xb6   : > { %s2680_s3 = scalar_lea.vmem [#allocation6], %s1646_s22 }
  0xb7   : > { %2264 = dma.done.wait (%p3583_p12), %s264_s10, 512  }
  0xb8   : > { %2266 = vsyncadd (%p3583_p12), %s264_s10, 4294966784  ;;  %s3584_s12 = sld [smem:[#allocation27_spill]]  ;;  %s3585_s9 = sld [smem:[#allocation20_spill]] }
  0xb9   : > { %s3586_s5 = sld [smem:[#allocation29_spill]] }
  0xbe   : > { %s272_s8 = sand.u32 1, %s3584_s12   ;;  %s274_s18 = sand.u32 1, %s3585_s9  }
  0xbf   : > { %s1647_s14 = sshll.u32 %s274_s18, 5  ;;  %s273_s15 = scalar_lea.sflag [#allocation10], %s272_s8 }
  0xc0   : > { %s2688_s19 = scalar_lea.vmem [#allocation9], %s1647_s14  ;;  %p3587_p7 = scmp.ne.s32.totalorder %s3586_s5, 0 }
  0xc2   : > { %2268 = dma.done.wait (%p3587_p7), %s273_s15, 512  }
  0xc3   : > { %2270 = vsyncadd (%p3587_p7), %s273_s15, 4294966784  ;;  %p3588_p3 = scmp.eq.s32.totalorder %s3584_s12, 0 }
  0xc5   : > { %2272 = dma.done.wait (%p3588_p3), [#allocation10], 256   ;;  %p3589_p11 = pmov %p3588_p3 }
  0xc6   : > { %p3590_p2 = pmov %p3588_p3 }
  0xc7   : > { %2274 = vsyncadd (%p3589_p11), [#allocation10], 4294967040 }
  0xc8   : > { %2276 = dma.done.wait (%p3590_p2), [#allocation13], 256   ;;  %p3591_p5 = pmov %p3590_p2 }
  0xc9   : > { %s2702_s29 = scalar_lea.vmem [#allocation14], %s1646_s22  ;;  %s3592_s4 = sld [smem:[#allocation23_spill]] }
  0xca   : > { %2278 = vsyncadd (%p3591_p5), [#allocation13], 4294967040 }
  0xcf   : > { %p1651_p4 = scmp.ne.s32.totalorder %s3592_s4, 0 }
  0xd0   : > { %v334_v0 = vld [vmem:[%s2680_s3 + $0x8] sm:$0xff] (!%p1651_p4)  ;;  %v336_v1 = vld [vmem:[%s2680_s3 + $0x18] sm:$0xff] (!%p1651_p4)  ;;  %v333_v2 = vld [vmem:[%s2680_s3] sm:$0xff] (!%p1651_p4)  ;;  %v321_v3 = vlaneseq (!%p1651_p4)  ;;  %v2344_v6 = vmov (!%p1651_p4), 0.0   ;;  %v2345_v8 = vmov (!%p1651_p4), -inf   ;;  %vm337_vm1 = vcmask (!%p1651_p4), 130048  }
  0xd1   : > { %320 = sbr.rel (%p1651_p4) target bundleno = 429 (0x1ad), region = 56  ;;  %v1695_v4 = vpack.c.bf16 (!%p1651_p4), %v336_v1, %v334_v0  ;;  %v335_v5 = vld [vmem:[%s2680_s3 + $0x10] sm:$0xff] (!%p1651_p4)  ;;  %327 = vst [vmem:[#allocation4] sm:$0xff] (!%p1651_p4), %v2344_v6  ;;  %328 = vst [vmem:[#allocation4 + $0x8] sm:$0xff] (!%p1651_p4), %v2344_v6  ;;  %408 = vmatprep.mubr.f32.mxu0 (!%p1651_p4), %v2344_v6  ;;  %414 = vmatprep.mubr.f32.mxu1 (!%p1651_p4), %v2344_v6  ;;  %v331_v9 = vld [vmem:[#allocation11] sm:$0xff] (!%p1651_p4) }
  0xd2   : > { %329 = vst [vmem:[#allocation4 + $0x10] sm:$0xff] (!%p1651_p4), %v2344_v6  ;;  %330 = vst [vmem:[#allocation4 + $0x18] sm:$0xff] (!%p1651_p4), %v2344_v6  ;;  %v1697_v7 = vpack.c.bf16 (!%p1651_p4), %v335_v5, %v333_v2  ;;  %vm323_vm0 = vcmp.lt.s32.totalorder (!%p1651_p4), %v321_v3, 256  ;;  %v332_v10 = vld [vmem:[#allocation11 + $0x8] sm:$0xff] (!%p1651_p4) }
  0xd3   : > { %1696 = vmatprep.subr.bf16.mxu0 (!%p1651_p4), %v1695_v4  ;;  %1771 = vmatprep.subr.bf16.mxu1 (!%p1651_p4), %v1695_v4  ;;  %325 = vst.msk [vmem:[#allocation2] sm:$0x3] (!%p1651_p4), %vm323_vm0, %v2345_v8  ;;  %326 = vst.msk [vmem:[#allocation3] sm:$0x3] (!%p1651_p4), %vm323_vm0, %v2344_v6 }
  0xd4   : > { %1698 = vmatpush1.bf16.msra.mxu0 (!%p1651_p4), %v1697_v7  ;;  %1772 = vmatpush1.bf16.msra.mxu1 (!%p1651_p4), %v1697_v7 }
  0xd7   : > { %1652 = vmatmul.mubr.msk.f32.vlgmr.msra.gmra.mrb[0].mxu0 (!%p1651_p4), %vm337_vm1, %v331_v9  ;;  %1653 = vmatmul.mubr.msk.f32.vlgmr.msra.gmra.mrb[0].mxu1 (!%p1651_p4), %vm337_vm1, %v332_v10 }
 0x1aa   : > { %v410_v11 = vpop.f32.mrb[0].mxu0  ;;  %v416_v12 = vpop.f32.mrb[0].mxu1 }
 0x1ab   : > { %421 = vst [vmem:[#allocation5] sm:$0xff] %v410_v11  ;;  %423 = vst [vmem:[#allocation5 + $0x10] sm:$0xff] %v416_v12  ;;  %v412_v13 = vpop.f32.mrb[1].mxu0  ;;  %v418_v14 = vpop.f32.mrb[1].mxu1 }
 0x1ac   : > { %422 = vst [vmem:[#allocation5 + $0x8] sm:$0xff] %v412_v13  ;;  %424 = vst [vmem:[#allocation5 + $0x18] sm:$0xff] %v418_v14 }
 0x1ad PF: > { %v425_v15 = vld [vmem:[%s2688_s19] sm:$0xff]  ;;  %v426_v16 = vld [vmem:[%s2688_s19 + $0x8] sm:$0xff]  ;;  %v427_v17 = vld [vmem:[%s2688_s19 + $0x10] sm:$0xff]  ;;  %v2346_v24 = vmov 0.0   ;;  %vm497_vm2 = vcmask 130048   ;;  %s3727_s28 = sld [smem:[#allocation23_spill]] }
 0x1ae   : > { %433 = vxpose.xlu0.b32.start [1/2] (short) %v425_v15, 128  ;;  %465 = vxpose.xlu1.b32.start [1/2] (short) %v426_v16, 128  ;;  %v428_v20 = vld [vmem:[%s2688_s19 + $0x18] sm:$0xff] }
 0x1af   : > { %658 = vmatprep.mubr.f32.mxu0 %v2346_v24  ;;  %1334 = vmatprep.mubr.f32.mxu1 %v426_v16 }
 0x1b2   : > { %v429_v22 = vld [vmem:[#allocation5] sm:$0xff]  ;;  %v431_v23 = vld [vmem:[#allocation5 + $0x10] sm:$0xff]  ;;  %434 = vxpose.xlu0.b32.end [2/2] (short) %v427_v17, 128  ;;  %466 = vxpose.xlu1.b32.end [2/2] (short) %v428_v20, 128 }
 0x1b3   : > { %v430_v18 = vld [vmem:[#allocation5 + $0x8] sm:$0xff]  ;;  %v432_v19 = vld [vmem:[#allocation5 + $0x18] sm:$0xff]  ;;  %v1701_v25 = vpack.c.bf16 %v431_v23, %v429_v22  ;;  %p1686_p10 = scmp.ne.s32.totalorder %s3727_s28, 1 }
 0x1b4   : > { %v1699_v21 = vpack.c.bf16 %v432_v19, %v430_v18 }
 0x1b6   : > { %1700 = vmatprep.subr.bf16.mxu0 %v1699_v21 }
 0x1b7   : > { %1702 = vmatpush1.bf16.msra.mxu0 %v1701_v25 }
 0x22e   : > { %v449_v26 = vpop.trf.xlu0  ;;  %v481_v35 = vpop.trf.xlu1 }
 0x22f   : > { %1654 = vmatmul.mubr.msk.f32.vlgmr.msra.gmra.mrb[0].mxu0 %vm497_vm2, %v449_v26 }
 0x230   : > { %664 = vmatprep.mubr.f32.mxu0 %v2346_v24 }
 0x232   : > { %v450_v27 = vpop.trf.xlu0  ;;  %v482_v37 = vpop.trf.xlu1 }
 0x233   : > { %1655 = vmatmul.mubr.msk.f32.gmra.mrb[2].mxu0 %vm497_vm2, %v450_v27 }
 0x234   : > { %670 = vmatprep.mubr.f32.mxu0 %v2346_v24 }
 0x236   : > { %v451_v28 = vpop.trf.xlu0  ;;  %v483_v40 = vpop.trf.xlu1 }
 0x237   : > { %1656 = vmatmul.mubr.msk.f32.gmra.mrb[4].mxu0 %vm497_vm2, %v451_v28 }
 0x238   : > { %676 = vmatprep.mubr.f32.mxu0 %v2346_v24 }
 0x23a   : > { %v452_v29 = vpop.trf.xlu0  ;;  %v484_v42 = vpop.trf.xlu1 }
 0x23b   : > { %1657 = vmatmul.mubr.msk.f32.gmra.mrb[6].mxu0 %vm497_vm2, %v452_v29 }
 0x23c   : > { %682 = vmatprep.mubr.f32.mxu0 %v2346_v24 }
 0x23e   : > { %v453_v30 = vpop.trf.xlu0  ;;  %v485_v45 = vpop.trf.xlu1 }
 0x23f   : > { %1658 = vmatmul.mubr.msk.f32.gmra.mrb[8].mxu0 %vm497_vm2, %v453_v30 }
 0x240   : > { %688 = vmatprep.mubr.f32.mxu0 %v2346_v24 }
 0x242   : > { %v454_v31 = vpop.trf.xlu0  ;;  %v486_v47 = vpop.trf.xlu1 }
 0x243   : > { %1659 = vmatmul.mubr.msk.f32.gmra.mrb[10].mxu0 %vm497_vm2, %v454_v31 }
 0x244   : > { %694 = vmatprep.mubr.f32.mxu0 %v2346_v24 }
 0x246   : > { %v455_v32 = vpop.trf.xlu0  ;;  %v487_v48 = vpop.trf.xlu1 }
 0x247   : > { %1660 = vmatmul.mubr.msk.f32.gmra.mrb[12].mxu0 %vm497_vm2, %v455_v32 }
 0x248   : > { %700 = vmatprep.mubr.f32.mxu0 %v2346_v24 }
 0x24a   : > { %v456_v33 = vpop.trf.xlu0  ;;  %v488_v49 = vpop.trf.xlu1 }
 0x24b   : > { %1661 = vmatmul.mubr.msk.f32.gmra.mrb[14].mxu0 %vm497_vm2, %v456_v33 }
 0x24c   : > { %706 = vmatprep.mubr.f32.mxu0 %v2346_v24 }
 0x24e   : > { %v457_v34 = vpop.trf.xlu0  ;;  %v489_v50 = vpop.trf.xlu1 }
 0x24f   : > { %1662 = vmatmul.mubr.msk.f32.gmra.mrb[16].mxu0 %vm497_vm2, %v457_v34 }
 0x250   : > { %712 = vmatprep.mubr.f32.mxu0 %v2346_v24 }
 0x252   : > { %v458_v36 = vpop.trf.xlu0  ;;  %v490_v51 = vpop.trf.xlu1 }
 0x253   : > { %1663 = vmatmul.mubr.msk.f32.gmra.mrb[18].mxu0 %vm497_vm2, %v458_v36 }
 0x254   : > { %718 = vmatprep.mubr.f32.mxu0 %v2346_v24 }
 0x256   : > { %v459_v38 = vpop.trf.xlu0  ;;  %v491_v52 = vpop.trf.xlu1 }
 0x257   : > { %1664 = vmatmul.mubr.msk.f32.gmra.mrb[20].mxu0 %vm497_vm2, %v459_v38 }
 0x258   : > { %724 = vmatprep.mubr.f32.mxu0 %v2346_v24 }
 0x25a   : > { %v460_v39 = vpop.trf.xlu0  ;;  %v492_v53 = vpop.trf.xlu1 }
 0x25b   : > { %1665 = vmatmul.mubr.msk.f32.gmra.mrb[22].mxu0 %vm497_vm2, %v460_v39 }
 0x25c   : > { %730 = vmatprep.mubr.f32.mxu0 %v2346_v24 }
 0x25e   : > { %v461_v41 = vpop.trf.xlu0  ;;  %v493_v54 = vpop.trf.xlu1 }
 0x25f   : > { %1666 = vmatmul.mubr.msk.f32.gmra.mrb[24].mxu0 %vm497_vm2, %v461_v41 }
 0x260   : > { %736 = vmatprep.mubr.f32.mxu0 %v2346_v24 }
 0x262   : > { %v462_v43 = vpop.trf.xlu0  ;;  %v494_v55 = vpop.trf.xlu1 }
 0x263   : > { %1667 = vmatmul.mubr.msk.f32.gmra.mrb[26].mxu0 %vm497_vm2, %v462_v43 }
 0x264   : > { %742 = vmatprep.mubr.f32.mxu0 %v2346_v24 }
 0x266   : > { %v463_v44 = vpop.trf.xlu0  ;;  %v495_v56 = vpop.trf.xlu1 }
 0x267   : > { %1668 = vmatmul.mubr.msk.f32.gmra.mrb[28].mxu0 %vm497_vm2, %v463_v44 }
 0x268   : > { %748 = vmatprep.mubr.f32.mxu0 %v2346_v24 }
 0x26a   : > { %v464_v46 = vpop.trf.xlu0  ;;  %v496_v57 = vpop.trf.xlu1 }
 0x26b   : > { %1669 = vmatmul.mubr.msk.f32.gmra.mrb[30].mxu0 %vm497_vm2, %v464_v46 }
 0x26c   : > { %754 = vmatprep.mubr.f32.mxu0 %v2346_v24 }
 0x26f   : > { %1670 = vmatmul.mubr.msk.f32.gmra.mrb[32].mxu0 %vm497_vm2, %v481_v35 }
 0x270   : > { %760 = vmatprep.mubr.f32.mxu0 %v2346_v24 }
 0x273   : > { %1671 = vmatmul.mubr.msk.f32.gmra.mrb[34].mxu0 %vm497_vm2, %v482_v37 }
 0x274   : > { %766 = vmatprep.mubr.f32.mxu0 %v2346_v24 }
 0x277   : > { %1672 = vmatmul.mubr.msk.f32.gmra.mrb[36].mxu0 %vm497_vm2, %v483_v40 }
 0x278   : > { %772 = vmatprep.mubr.f32.mxu0 %v2346_v24 }
 0x27b   : > { %1673 = vmatmul.mubr.msk.f32.gmra.mrb[38].mxu0 %vm497_vm2, %v484_v42 }
 0x27c   : > { %778 = vmatprep.mubr.f32.mxu0 %v2346_v24 }
 0x27f   : > { %1674 = vmatmul.mubr.msk.f32.gmra.mrb[40].mxu0 %vm497_vm2, %v485_v45 }
 0x280   : > { %784 = vmatprep.mubr.f32.mxu0 %v2346_v24 }
 0x283   : > { %1675 = vmatmul.mubr.msk.f32.gmra.mrb[42].mxu0 %vm497_vm2, %v486_v47 }
 0x284   : > { %790 = vmatprep.mubr.f32.mxu0 %v2346_v24 }
 0x287   : > { %1676 = vmatmul.mubr.msk.f32.gmra.mrb[44].mxu0 %vm497_vm2, %v487_v48 }
 0x288   : > { %796 = vmatprep.mubr.f32.mxu0 %v2346_v24 }
 0x28b   : > { %1677 = vmatmul.mubr.msk.f32.gmra.mrb[46].mxu0 %vm497_vm2, %v488_v49 }
 0x28c   : > { %802 = vmatprep.mubr.f32.mxu0 %v2346_v24 }
 0x28f   : > { %1678 = vmatmul.mubr.msk.f32.gmra.mrb[48].mxu0 %vm497_vm2, %v489_v50 }
 0x290   : > { %808 = vmatprep.mubr.f32.mxu0 %v2346_v24 }
 0x293   : > { %1679 = vmatmul.mubr.msk.f32.gmra.mrb[50].mxu0 %vm497_vm2, %v490_v51 }
 0x294   : > { %814 = vmatprep.mubr.f32.mxu0 %v2346_v24 }
 0x297   : > { %1680 = vmatmul.mubr.msk.f32.gmra.mrb[52].mxu0 %vm497_vm2, %v491_v52 }
 0x298   : > { %820 = vmatprep.mubr.f32.mxu0 %v2346_v24 }
 0x29b   : > { %1681 = vmatmul.mubr.msk.f32.gmra.mrb[54].mxu0 %vm497_vm2, %v492_v53 }
 0x29c   : > { %826 = vmatprep.mubr.f32.mxu0 %v2346_v24 }
 0x29f   : > { %1682 = vmatmul.mubr.msk.f32.gmra.mrb[56].mxu0 %vm497_vm2, %v493_v54 }
 0x2a0   : > { %832 = vmatprep.mubr.f32.mxu0 %v2346_v24 }
 0x2a3   : > { %1683 = vmatmul.mubr.msk.f32.gmra.mrb[58].mxu0 %vm497_vm2, %v494_v55 }
 0x2a4   : > { %838 = vmatprep.mubr.f32.mxu0 %v2346_v24 }
 0x2a7   : > { %1684 = vmatmul.mubr.msk.f32.gmra.mrb[60].mxu0 %vm497_vm2, %v495_v56 }
 0x2a8   : > { %844 = vmatprep.mubr.f32.mxu0 %v2346_v24 }
 0x2ab   : > { %1685 = vmatmul.mubr.msk.f32.gmra.mrb[62].mxu0 %vm497_vm2, %v496_v57 }
 0x302   : > { %v2777_v58 = vpop.f32.mrb[0].mxu0 }
 0x303   : > { %v2779_v59 = vpop.f32.mrb[1].mxu0 }
 0x306   : > { %v2781_v60 = vpop.f32.mrb[2].mxu0 }
 0x307   : > { %v2783_v61 = vpop.f32.mrb[3].mxu0 }
 0x30a   : > { %v2785_v62 = vpop.f32.mrb[4].mxu0 }
 0x30b   : > { %v852_v63 = vmax.f32 %v2777_v58, %v2785_v62  ;;  %v2789_v0 = vpop.f32.mrb[5].mxu0 }
 0x30c   : > { %v889_v1 = vmax.f32 %v2779_v59, %v2789_v0 }
 0x30e   : > { %v2793_v2 = vpop.f32.mrb[6].mxu0 }
 0x30f   : > { %v853_v3 = vmax.f32 %v2781_v60, %v2793_v2  ;;  %v2797_v4 = vpop.f32.mrb[7].mxu0 }
 0x310   : > { %v890_v5 = vmax.f32 %v2783_v61, %v2797_v4 }
 0x312   : > { %v2801_v6 = vpop.f32.mrb[8].mxu0 }
 0x313   : > { %v854_v7 = vmax.f32 %v852_v63, %v2801_v6  ;;  %v2804_v8 = vpop.f32.mrb[9].mxu0 }
 0x314   : > { %v891_v9 = vmax.f32 %v889_v1, %v2804_v8 }
 0x316   : > { %v2807_v10 = vpop.f32.mrb[10].mxu0 }
 0x317   : > { %v855_v11 = vmax.f32 %v853_v3, %v2807_v10  ;;  %v2810_v12 = vpop.f32.mrb[11].mxu0 }
 0x318   : > { %v892_v13 = vmax.f32 %v890_v5, %v2810_v12 }
 0x31a   : > { %v2813_v14 = vpop.f32.mrb[12].mxu0 }
 0x31b   : > { %v856_v15 = vmax.f32 %v854_v7, %v2813_v14  ;;  %v2816_v16 = vpop.f32.mrb[13].mxu0 }
 0x31c   : > { %v893_v17 = vmax.f32 %v891_v9, %v2816_v16 }
 0x31e   : > { %v2819_v18 = vpop.f32.mrb[14].mxu0 }
 0x31f   : > { %v857_v19 = vmax.f32 %v855_v11, %v2819_v18  ;;  %v2822_v20 = vpop.f32.mrb[15].mxu0 }
 0x320   : > { %v894_v21 = vmax.f32 %v892_v13, %v2822_v20 }
 0x322   : > { %v2825_v22 = vpop.f32.mrb[16].mxu0 }
 0x323   : > { %v858_v23 = vmax.f32 %v856_v15, %v2825_v22  ;;  %v2828_v24 = vpop.f32.mrb[17].mxu0 }
 0x324   : > { %v895_v25 = vmax.f32 %v893_v17, %v2828_v24 }
 0x326   : > { %v2831_v26 = vpop.f32.mrb[18].mxu0 }
 0x327   : > { %v859_v27 = vmax.f32 %v857_v19, %v2831_v26  ;;  %v2834_v28 = vpop.f32.mrb[19].mxu0 }
 0x328   : > { %v896_v29 = vmax.f32 %v894_v21, %v2834_v28 }
 0x32a   : > { %v2837_v30 = vpop.f32.mrb[20].mxu0 }
 0x32b   : > { %v860_v31 = vmax.f32 %v858_v23, %v2837_v30  ;;  %v2840_v32 = vpop.f32.mrb[21].mxu0 }
 0x32c   : > { %v897_v33 = vmax.f32 %v895_v25, %v2840_v32 }
 0x32e   : > { %v2843_v34 = vpop.f32.mrb[22].mxu0 }
 0x32f   : > { %v861_v35 = vmax.f32 %v859_v27, %v2843_v34  ;;  %v2846_v36 = vpop.f32.mrb[23].mxu0 }
 0x330   : > { %v898_v37 = vmax.f32 %v896_v29, %v2846_v36 }
 0x332   : > { %v2849_v38 = vpop.f32.mrb[24].mxu0 }
 0x333   : > { %v862_v39 = vmax.f32 %v860_v31, %v2849_v38  ;;  %v2852_v40 = vpop.f32.mrb[25].mxu0 }
 0x334   : > { %v899_v41 = vmax.f32 %v897_v33, %v2852_v40 }
 0x336   : > { %v2855_v42 = vpop.f32.mrb[26].mxu0 }
 0x337   : > { %v863_v43 = vmax.f32 %v861_v35, %v2855_v42  ;;  %v2858_v44 = vpop.f32.mrb[27].mxu0 }
 0x338   : > { %v900_v45 = vmax.f32 %v898_v37, %v2858_v44 }
 0x33a   : > { %v2861_v46 = vpop.f32.mrb[28].mxu0 }
 0x33b   : > { %v864_v47 = vmax.f32 %v862_v39, %v2861_v46  ;;  %v2864_v48 = vpop.f32.mrb[29].mxu0 }
 0x33c   : > { %v901_v49 = vmax.f32 %v899_v41, %v2864_v48 }
 0x33e   : > { %v2867_v50 = vpop.f32.mrb[30].mxu0 }
 0x33f   : > { %v865_v51 = vmax.f32 %v863_v43, %v2867_v50  ;;  %v2870_v52 = vpop.f32.mrb[31].mxu0 }
 0x340   : > { %v902_v53 = vmax.f32 %v900_v45, %v2870_v52 }
 0x342   : > { %v2873_v54 = vpop.f32.mrb[32].mxu0 }
 0x343   : > { %v866_v55 = vmax.f32 %v864_v47, %v2873_v54  ;;  %v2876_v56 = vpop.f32.mrb[33].mxu0 }
 0x344   : > { %v903_v57 = vmax.f32 %v901_v49, %v2876_v56 }
 0x346   : > { %v2879_v63 = vpop.f32.mrb[34].mxu0 }
 0x347   : > { %v867_v1 = vmax.f32 %v865_v51, %v2879_v63  ;;  %v2882_v3 = vpop.f32.mrb[35].mxu0 }
 0x348   : > { %v904_v5 = vmax.f32 %v902_v53, %v2882_v3 }
 0x34a   : > { %v2885_v7 = vpop.f32.mrb[36].mxu0 }
 0x34b   : > { %v868_v9 = vmax.f32 %v866_v55, %v2885_v7  ;;  %v2888_v11 = vpop.f32.mrb[37].mxu0 }
 0x34c   : > { %v905_v13 = vmax.f32 %v903_v57, %v2888_v11 }
 0x34e   : > { %v2891_v15 = vpop.f32.mrb[38].mxu0 }
 0x34f   : > { %v869_v17 = vmax.f32 %v867_v1, %v2891_v15  ;;  %v2894_v19 = vpop.f32.mrb[39].mxu0 }
 0x350   : > { %3593 = vst [vmem:[#allocation34_spill] sm:$0xff] %v2894_v19  ;;  %v906_v21 = vmax.f32 %v904_v5, %v2894_v19 }
 0x352   : > { %v2897_v23 = vpop.f32.mrb[40].mxu0 }
 0x353   : > { %3594 = vst [vmem:[#allocation35_spill] sm:$0xff] %v2897_v23  ;;  %v870_v25 = vmax.f32 %v868_v9, %v2897_v23  ;;  %v2900_v27 = vpop.f32.mrb[41].mxu0 }
 0x354   : > { %3595 = vst [vmem:[#allocation36_spill] sm:$0xff] %v2900_v27  ;;  %v907_v29 = vmax.f32 %v905_v13, %v2900_v27 }
 0x356   : > { %v2903_v31 = vpop.f32.mrb[42].mxu0 }
 0x357   : > { %3596 = vst [vmem:[#allocation37_spill] sm:$0xff] %v2903_v31  ;;  %v871_v33 = vmax.f32 %v869_v17, %v2903_v31  ;;  %v2906_v35 = vpop.f32.mrb[43].mxu0 }
 0x358   : > { %3597 = vst [vmem:[#allocation38_spill] sm:$0xff] %v2906_v35  ;;  %v908_v37 = vmax.f32 %v906_v21, %v2906_v35 }
 0x35a   : > { %v2909_v39 = vpop.f32.mrb[44].mxu0 }
 0x35b   : > { %3598 = vst [vmem:[#allocation39_spill] sm:$0xff] %v2909_v39  ;;  %v872_v41 = vmax.f32 %v870_v25, %v2909_v39  ;;  %v2912_v43 = vpop.f32.mrb[45].mxu0 }
 0x35c   : > { %3599 = vst [vmem:[#allocation40_spill] sm:$0xff] %v2912_v43  ;;  %v909_v45 = vmax.f32 %v907_v29, %v2912_v43  ;;  %v2347_v43 = vmov 1966171168  }
 0x35e   : > { %v2915_v47 = vpop.f32.mrb[46].mxu0 }
 0x35f   : > { %3600 = vst [vmem:[#allocation41_spill] sm:$0xff] %v2915_v47  ;;  %v873_v49 = vmax.f32 %v871_v33, %v2915_v47  ;;  %v2918_v51 = vpop.f32.mrb[47].mxu0 }
 0x360   : > { %3601 = vst [vmem:[#allocation42_spill] sm:$0xff] %v2918_v51  ;;  %v910_v53 = vmax.f32 %v908_v37, %v2918_v51 }
 0x362   : > { %v2921_v55 = vpop.f32.mrb[48].mxu0 }
 0x363   : > { %3602 = vst [vmem:[#allocation43_spill] sm:$0xff] %v2921_v55  ;;  %v874_v57 = vmax.f32 %v872_v41, %v2921_v55  ;;  %v2924_v1 = vpop.f32.mrb[49].mxu0 }
 0x364   : > { %3603 = vst [vmem:[#allocation44_spill] sm:$0xff] %v2924_v1  ;;  %v911_v5 = vmax.f32 %v909_v45, %v2924_v1 }
 0x366   : > { %v2927_v9 = vpop.f32.mrb[50].mxu0 }
 0x367   : > { %3604 = vst [vmem:[#allocation45_spill] sm:$0xff] %v2927_v9  ;;  %v875_v13 = vmax.f32 %v873_v49, %v2927_v9  ;;  %v2930_v17 = vpop.f32.mrb[51].mxu0 }
 0x368   : > { %3605 = vst [vmem:[#allocation46_spill] sm:$0xff] %v2930_v17  ;;  %v912_v21 = vmax.f32 %v910_v53, %v2930_v17 }
 0x36a   : > { %v2933_v25 = vpop.f32.mrb[52].mxu0 }
 0x36b   : > { %3606 = vst [vmem:[#allocation47_spill] sm:$0xff] %v2933_v25  ;;  %v876_v29 = vmax.f32 %v874_v57, %v2933_v25  ;;  %v2936_v33 = vpop.f32.mrb[53].mxu0 }
 0x36c   : > { %3607 = vst [vmem:[#allocation48_spill] sm:$0xff] %v2936_v33  ;;  %v913_v37 = vmax.f32 %v911_v5, %v2936_v33 }
 0x36e   : > { %v2939_v41 = vpop.f32.mrb[54].mxu0 }
 0x36f   : > { %3608 = vst [vmem:[#allocation49_spill] sm:$0xff] %v2939_v41  ;;  %v877_v45 = vmax.f32 %v875_v13, %v2939_v41  ;;  %v2942_v1 = vpop.f32.mrb[55].mxu0 }
 0x370   : > { %3609 = vst [vmem:[#allocation50_spill] sm:$0xff] %v2942_v1  ;;  %v914_v49 = vmax.f32 %v912_v21, %v2942_v1 }
 0x372   : > { %v2945_v9 = vpop.f32.mrb[56].mxu0 }
 0x373   : > { %3610 = vst [vmem:[#allocation51_spill] sm:$0xff] %v2945_v9  ;;  %v878_v53 = vmax.f32 %v876_v29, %v2945_v9  ;;  %v2948_v17 = vpop.f32.mrb[57].mxu0 }
 0x374   : > { %3611 = vst [vmem:[#allocation52_spill] sm:$0xff] %v2948_v17  ;;  %v915_v57 = vmax.f32 %v913_v37, %v2948_v17 }
 0x376   : > { %v2951_v25 = vpop.f32.mrb[58].mxu0 }
 0x377   : > { %3612 = vst [vmem:[#allocation53_spill] sm:$0xff] %v2951_v25  ;;  %v879_v5 = vmax.f32 %v877_v45, %v2951_v25  ;;  %v2954_v33 = vpop.f32.mrb[59].mxu0 }
 0x378   : > { %3613 = vst [vmem:[#allocation54_spill] sm:$0xff] %v2954_v33  ;;  %v916_v13 = vmax.f32 %v914_v49, %v2954_v33 }
 0x37a   : > { %v2957_v41 = vpop.f32.mrb[60].mxu0 }
 0x37b   : > { %3614 = vst [vmem:[#allocation55_spill] sm:$0xff] %v2957_v41  ;;  %v880_v21 = vmax.f32 %v878_v53, %v2957_v41  ;;  %v2960_v1 = vpop.f32.mrb[61].mxu0  ;;  %v930_v53 = vunpack.c.l.s4 %v2347_v43  ;;  %v932_v41 = vlaneseq }
 0x37c   : > { %3615 = vst [vmem:[#allocation56_spill] sm:$0xff] %v2960_v1  ;;  %v917_v29 = vmax.f32 %v915_v57, %v2960_v1 }
 0x37d   : > { %v931_v31 = vunpack.c.0.s8 %v930_v53  ;;  %v933_v27 = vshrl.u32 %v932_v41, 7  ;;  %vm2977_vm3 = vcmp.lt.s32.totalorder %v932_v41, 256 }
 0x37e   : > { %v2963_v9 = vpop.f32.mrb[62].mxu0 }
 0x37f   : > { %3616 = vst [vmem:[#allocation57_spill] sm:$0xff] %v2963_v9  ;;  %v881_v37 = vmax.f32 %v879_v5, %v2963_v9  ;;  %v2966_v17 = vpop.f32.mrb[63].mxu0  ;;  %v2973_v43 = vsub.s32 0, %v933_v27 }
 0x380   : > { %3617 = vst [vmem:[#allocation58_spill] sm:$0xff] %v2966_v17  ;;  %v918_v45 = vmax.f32 %v916_v13, %v2966_v17  ;;  %v2969_v13 = vsub.s32 %v931_v31, %v933_v27 }
 0x381   : > { %v882_v25 = vmax.f32 %v880_v21, %v881_v37 }
 0x382   : > { %v919_v55 = vmax.f32 %v917_v29, %v918_v45  ;;  %3618 = vst [vmem:[#allocation59_spill] sm:$0xff] %v2969_v13 }
 0x383   : > { %v883_v51 = vrot.slane %v882_v25, 4  ;;  %v3644_v53 = vld [vmem:[#allocation56_spill] sm:$0xff] }
 0x384   : > { %v920_v49 = vrot.slane %v919_v55, 4 }
 0x385   : > { %v884_v33 = vmax.f32 %v882_v25, %v883_v51  ;;  %v851_v51 = vld [vmem:[#allocation2] sm:$0x3]  ;;  %v2975_v25 = vsub.s32 1, %v933_v27 }
 0x386   : > { %v921_v47 = vmax.f32 %v919_v55, %v920_v49  ;;  %v3645_v49 = vld [vmem:[#allocation57_spill] sm:$0xff] }
 0x387   : > { %v885_v39 = vrot.slane %v884_v33, 2 }
 0x388   : > { %v922_v35 = vrot.slane %v921_v47, 2 }
 0x389   : > { %v886_v57 = vmax.f32 %v884_v33, %v885_v39 }
 0x38a   : > { %v923_v1 = vmax.f32 %v921_v47, %v922_v35  ;;  %v3619_v35 = vmov 0 }
 0x38b   : > { %v887_v5 = vrot.slane %v886_v57, 1  ;;  %v3620_v35 = vsel %vm2977_vm3, 4294967295, %v3619_v35 }
 0x38c   : > { %v924_v9 = vrot.slane %v923_v1, 1  ;;  %3621 = vst [vmem:[#allocation60_spill] sm:$0xff] %v3620_v35  ;;  %v3639_v35 = vld [vmem:[#allocation51_spill] sm:$0xff] }
 0x38d   : > { %v888_v23 = vmax.f32 %v886_v57, %v887_v5  ;;  %v3642_v5 = vld [vmem:[#allocation54_spill] sm:$0xff] }
 0x38e   : > { %v925_v19 = vmax.f32 %v923_v1, %v924_v9 }
 0x390   : > { %v928_v21 = vcombine.low %v888_v23, %v925_v19 }
 0x392   : > { %v935_v29 = vrot.slane %v928_v21, %v2969_v13  ;;  %v3622_v21 = vld [vmem:[#allocation34_spill] sm:$0xff] }
 0x394   : > { %v942_v55 = vrot.slane %v935_v29, %v2969_v13  ;;  %v3623_v29 = vld [vmem:[#allocation35_spill] sm:$0xff] }
 0x396   : > { %v944_v39 = vmax.f32 %v851_v51, %v942_v55  ;;  %v3625_v55 = vld [vmem:[#allocation37_spill] sm:$0xff] }
 0x398   : > { %v945_v47 = vsub.f32 %v851_v51, %v944_v39  ;;  %v2982_v1 = vrot.slane %v944_v39, %v2973_v43  ;;  %v2985_v19 = vrot.slane %v944_v39, %v2975_v25  ;;  %1355 = vst.msk [vmem:[#allocation2] sm:$0x3] %vm2977_vm3, %v944_v39  ;;  %v3624_v51 = vld [vmem:[#allocation36_spill] sm:$0xff]  ;;  %v3626_v39 = vld [vmem:[#allocation38_spill] sm:$0xff] }
 0x39a   : > { %v946_v45 = vmul.f32 1.442695, %v945_v47  ;;  %v3641_v47 = vld [vmem:[#allocation53_spill] sm:$0xff]  ;;  %v3646_v41 = vsub.f32 %v2777_v58, %v2982_v1  ;;  %v3647_v33 = vsub.f32 %v2779_v59, %v2985_v19  ;;  %v3648_v31 = vsub.f32 %v2781_v60, %v2982_v1 }
 0x39b   : > { %v3649_v27 = vsub.f32 %v2783_v61, %v2985_v19  ;;  %v3650_v37 = vsub.f32 %v2785_v62, %v2982_v1  ;;  %v3651_v58 = vsub.f32 %v2789_v0, %v2985_v19  ;;  %v3653_v61 = vsub.f32 %v2797_v4, %v2985_v19 }
 0x39c   : > { %v1023_v13 = vmul.f32 1.442695, %v3646_v41  ;;  %v1025_v9 = vmul.f32 1.442695, %v3647_v33  ;;  %1932 = vpow2.f32 %v946_v45  ;;  %v1027_v57 = vmul.f32 1.442695, %v3648_v31 }
 0x39d   : > { %v1029_v23 = vmul.f32 1.442695, %v3649_v27  ;;  %v1031_v17 = vmul.f32 1.442695, %v3650_v37  ;;  %v1033_v59 = vmul.f32 1.442695, %v3651_v58  ;;  %v3652_v33 = vsub.f32 %v2793_v2, %v2982_v1 }
 0x39e   : > { %1934 = vpow2.f32 %v1023_v13  ;;  %v1037_v27 = vmul.f32 1.442695, %v3653_v61  ;;  %v3654_v62 = vsub.f32 %v2801_v6, %v2982_v1  ;;  %v3655_v0 = vsub.f32 %v2804_v8, %v2985_v19 }
 0x39f   : > { %1936 = vpow2.f32 %v1025_v9  ;;  %v1035_v60 = vmul.f32 1.442695, %v3652_v33  ;;  %v3656_v2 = vsub.f32 %v2807_v10, %v2982_v1  ;;  %v3657_v4 = vsub.f32 %v2810_v12, %v2985_v19 }
 0x3a0   : > { %1938 = vpow2.f32 %v1027_v57  ;;  %v1039_v13 = vmul.f32 1.442695, %v3654_v62  ;;  %v1041_v31 = vmul.f32 1.442695, %v3655_v0  ;;  %v3658_v6 = vsub.f32 %v2813_v14, %v2982_v1 }
 0x3a1   : > { %1940 = vpow2.f32 %v1029_v23  ;;  %v1043_v9 = vmul.f32 1.442695, %v3656_v2  ;;  %v1045_v23 = vmul.f32 1.442695, %v3657_v4  ;;  %v3659_v8 = vsub.f32 %v2816_v16, %v2985_v19 }
 0x3a2   : > { %1942 = vpow2.f32 %v1031_v17  ;;  %v1047_v17 = vmul.f32 1.442695, %v3658_v6  ;;  %v3660_v10 = vsub.f32 %v2819_v18, %v2982_v1  ;;  %v3661_v58 = vsub.f32 %v2822_v20, %v2985_v19 }
 0x3a3   : > { %1944 = vpow2.f32 %v1033_v59  ;;  %v1049_v37 = vmul.f32 1.442695, %v3659_v8  ;;  %v3662_v33 = vsub.f32 %v2825_v22, %v2982_v1  ;;  %v3663_v61 = vsub.f32 %v2828_v24, %v2985_v19 }
 0x3a4   : > { %1946 = vpow2.f32 %v1035_v60  ;;  %v1051_v57 = vmul.f32 1.442695, %v3660_v10  ;;  %v1053_v14 = vmul.f32 1.442695, %v3661_v58  ;;  %v3664_v62 = vsub.f32 %v2831_v26, %v2982_v1 }
 0x3a5   : > { %1948 = vpow2.f32 %v1037_v27  ;;  %v1055_v60 = vmul.f32 1.442695, %v3662_v33  ;;  %v1057_v27 = vmul.f32 1.442695, %v3663_v61  ;;  %v3665_v0 = vsub.f32 %v2834_v28, %v2985_v19 }
 0x3a6   : > { %1950 = vpow2.f32 %v1039_v13  ;;  %v3156_v41 = vpop.eup %1932  ;;  %v1059_v20 = vmul.f32 1.442695, %v3664_v62  ;;  %v3666_v2 = vsub.f32 %v2837_v30, %v2982_v1  ;;  %v3667_v4 = vsub.f32 %v2840_v32, %v2985_v19 }
 0x3a7   : > { %1952 = vpow2.f32 %v1041_v31  ;;  %v1061_v22 = vmul.f32 1.442695, %v3665_v0  ;;  %v3668_v26 = vsub.f32 %v2843_v34, %v2982_v1  ;;  %v3669_v28 = vsub.f32 %v2846_v36, %v2985_v19 }
 0x3a8   : > { %v1935_v45 = vpop.eup %1934  ;;  %1954 = vpow2.f32 %v1043_v9  ;;  %v1063_v24 = vmul.f32 1.442695, %v3666_v2  ;;  %v3670_v30 = vsub.f32 %v2849_v38, %v2982_v1  ;;  %v3671_v10 = vsub.f32 %v2852_v40, %v2985_v19 }
 0x3a9   : > { %v1937_v12 = vpop.eup %1936  ;;  %1956 = vpow2.f32 %v1045_v23  ;;  %v1065_v23 = vmul.f32 1.442695, %v3667_v4  ;;  %v1067_v6 = vmul.f32 1.442695, %v3668_v26  ;;  %v1069_v8 = vmul.f32 1.442695, %v3669_v28 }
 0x3aa   : > { %v1939_v59 = vpop.eup %1938  ;;  %1958 = vpow2.f32 %v1047_v17  ;;  %v1073_v32 = vmul.f32 1.442695, %v3671_v10  ;;  %v3672_v34 = vsub.f32 %v2855_v42, %v2982_v1 }
 0x3ab   : > { %v1941_v16 = vpop.eup %1940  ;;  %1960 = vpow2.f32 %v1049_v37  ;;  %v1071_v37 = vmul.f32 1.442695, %v3670_v30  ;;  %v1153_v36 = vadd.f32 %v1939_v59, %v1935_v45  ;;  %v3676_v30 = vsub.f32 %v2867_v50, %v2982_v1 }
 0x3ac   : > { %v3173_v18 = vpop.eup %1942  ;;  %1962 = vpow2.f32 %v1051_v57  ;;  %v1075_v58 = vmul.f32 1.442695, %v3672_v34  ;;  %v1190_v61 = vadd.f32 %v1941_v16, %v1937_v12  ;;  %v1703_v38 = vpack.c.bf16 %v1941_v16, %v1937_v12 }
 0x3ad   : > { %v1945_v13 = vpop.eup %1944  ;;  %1964 = vpow2.f32 %v1053_v14  ;;  %v3673_v14 = vsub.f32 %v2858_v44, %v2985_v19  ;;  %v1154_v40 = vadd.f32 %v3173_v18, %v1153_v36  ;;  %v3218_v12 = vrot.slane %v3156_v41, %v2975_v25 }
 0x3ae   : > { %v1947_v31 = vpop.eup %1946  ;;  %1966 = vpow2.f32 %v1055_v60  ;;  %v1191_v42 = vadd.f32 %v1945_v13, %v1190_v61  ;;  %1704 = vmatprep.subr.bf16.mxu1 %v1703_v38  ;;  %v3674_v16 = vsub.f32 %v2861_v46, %v2982_v1  ;;  %v1083_v46 = vmul.f32 1.442695, %v3676_v30 }
 0x3af   : > { %v1949_v9 = vpop.eup %1948  ;;  %1968 = vpow2.f32 %v1057_v27  ;;  %v1077_v33 = vmul.f32 1.442695, %v3673_v14  ;;  %v1705_v27 = vpack.c.bf16 %v1939_v59, %v1935_v45  ;;  %v1709_v0 = vpack.c.bf16 %v1947_v31, %v3173_v18 }
 0x3b0   : > { %v3190_v17 = vpop.eup %1950  ;;  %1970 = vpow2.f32 %v1059_v20  ;;  %v1707_v20 = vpack.c.bf16 %v1949_v9, %v1945_v13  ;;  %v3214_v45 = vrot.slane %v3156_v41, %v2973_v43  ;;  %v1079_v18 = vmul.f32 1.442695, %v3674_v16 }
 0x3b1   : > { %v1953_v57 = vpop.eup %1952  ;;  %1972 = vpow2.f32 %v1061_v22  ;;  %1706 = vmatpush1.bf16.msra.mxu1 %v1705_v27  ;;  %v1192_v13 = vadd.f32 %v1949_v9, %v1191_v42  ;;  %v3678_v14 = vsub.f32 %v2873_v54, %v2982_v1  ;;  %v3680_v38 = vsub.f32 %v2879_v63, %v2982_v1 }
 0x3b2   : > { %v1955_v60 = vpop.eup %1954  ;;  %1974 = vpow2.f32 %v1063_v24  ;;  %v1155_v24 = vadd.f32 %v1947_v31, %v1154_v40  ;;  %1708 = vmatprep.subr.bf16.mxu1 %v1707_v20  ;;  %v3675_v31 = vsub.f32 %v2864_v48, %v2985_v19  ;;  %v3681_v20 = vsub.f32 %v2882_v3, %v2985_v19 }
 0x3b3   : > { %v1957_v62 = vpop.eup %1956  ;;  %1976 = vpow2.f32 %v1065_v23  ;;  %v1713_v2 = vpack.c.bf16 %v1955_v60, %v3190_v17  ;;  %v1091_v54 = vmul.f32 1.442695, %v3680_v38  ;;  %v3682_v42 = vsub.f32 %v2885_v7, %v2982_v1  ;;  %v3692_v38 = vld [vmem:[#allocation40_spill] sm:$0xff] }
 0x3b4   : > { %v3209_v22 = vpop.eup %1958  ;;  %1978 = vpow2.f32 %v1067_v6  ;;  %v1711_v44 = vpack.c.bf16 %v1957_v62, %v1953_v57  ;;  %v1081_v26 = vmul.f32 1.442695, %v3675_v31  ;;  %v1156_v6 = vadd.f32 %v3190_v17, %v1155_v24 }
 0x3b5   : > { %v1961_v4 = vpop.eup %1960  ;;  %1980 = vpow2.f32 %v1069_v8  ;;  %1710 = vmatpush1.bf16.msra.mxu1 %v1709_v0  ;;  %v3686_v30 = vsub.f32 %v3623_v29, %v2982_v1 }
 0x3b6   : > { %v1963_v59 = vpop.eup %1962  ;;  %1982 = vpow2.f32 %v1071_v37  ;;  %v1193_v37 = vadd.f32 %v1953_v57, %v1192_v13  ;;  %v1157_v34 = vadd.f32 %v1955_v60, %v1156_v6  ;;  %1712 = vmatprep.subr.bf16.mxu1 %v1711_v44  ;;  %v3679_v57 = vsub.f32 %v2876_v56, %v2985_v19 }
 0x3b7   : > { %v1965_v23 = vpop.eup %1964  ;;  %1984 = vpow2.f32 %v1073_v32  ;;  %v1717_v28 = vpack.c.bf16 %v1963_v59, %v3209_v22  ;;  %v3677_v32 = vsub.f32 %v2870_v52, %v2985_v19  ;;  %v1093_v56 = vmul.f32 1.442695, %v3681_v20 }
 0x3b8   : > { %v3228_v8 = vpop.eup %1966  ;;  %1986 = vpow2.f32 %v1075_v58  ;;  %v1715_v9 = vpack.c.bf16 %v1965_v23, %v1961_v4  ;;  %v1087_v58 = vmul.f32 1.442695, %v3678_v14  ;;  %v1194_v36 = vadd.f32 %v1957_v62, %v1193_v37 }
 0x3b9   : > { %v1969_v10 = vpop.eup %1968  ;;  %1988 = vpow2.f32 %v1077_v33  ;;  %v1085_v48 = vmul.f32 1.442695, %v3677_v32  ;;  %v1089_v33 = vmul.f32 1.442695, %v3679_v57  ;;  %v1158_v61 = vadd.f32 %v3209_v22, %v1157_v34  ;;  %1714 = vmatpush1.bf16.msra.mxu1 %v1713_v2  ;;  %v3690_v57 = vld [vmem:[#allocation39_spill] sm:$0xff] }
 0x3ba   : > { %v1971_v17 = vpop.eup %1970  ;;  %1990 = vpow2.f32 %v1079_v18  ;;  %v1195_v27 = vadd.f32 %v1961_v4, %v1194_v36  ;;  %v1095_v44 = vmul.f32 1.442695, %v3682_v42  ;;  %1716 = vmatprep.subr.bf16.mxu1 %v1715_v9  ;;  %v3683_v4 = vsub.f32 %v2888_v11, %v2985_v19 }
 0x3bb   : > { %v1973_v50 = vpop.eup %1972  ;;  %1992 = vpow2.f32 %v1081_v26  ;;  %v1721_v52 = vpack.c.bf16 %v1971_v17, %v3228_v8  ;;  %v1159_v0 = vadd.f32 %v1963_v59, %v1158_v61  ;;  %v3684_v2 = vsub.f32 %v2891_v15, %v2982_v1 }
 0x3bc   : > { %v3244_v60 = vpop.eup %1974  ;;  %1994 = vpow2.f32 %v1083_v46  ;;  %v1719_v62 = vpack.c.bf16 %v1973_v50, %v1969_v10  ;;  %v1196_v24 = vadd.f32 %v1965_v23, %v1195_v27  ;;  %v1097_v16 = vmul.f32 1.442695, %v3683_v4 }
 0x3bd   : > { %v1977_v40 = vpop.eup %1976  ;;  %1996 = vpow2.f32 %v1085_v48  ;;  %v1160_v18 = vadd.f32 %v3228_v8, %v1159_v0  ;;  %v1099_v7 = vmul.f32 1.442695, %v3684_v2  ;;  %v3685_v26 = vsub.f32 %v3622_v21, %v2985_v19  ;;  %1718 = vmatpush1.bf16.msra.mxu1 %v1717_v28 }
 0x3be   : > { %v1979_v22 = vpop.eup %1978  ;;  %1998 = vpow2.f32 %v1087_v58  ;;  %v1197_v13 = vadd.f32 %v1969_v10, %v1196_v24  ;;  %v1103_v46 = vmul.f32 1.442695, %v3686_v30  ;;  %1720 = vmatprep.subr.bf16.mxu1 %v1719_v62  ;;  %v3687_v9 = vsub.f32 %v3624_v51, %v2985_v19 }
 0x3bf   : > { %v1981_v63 = vpop.eup %1980  ;;  %2000 = vpow2.f32 %v1089_v33  ;;  %v1725_v3 = vpack.c.bf16 %v1979_v22, %v3244_v60  ;;  %v1101_v11 = vmul.f32 1.442695, %v3685_v26  ;;  %v1161_v6 = vadd.f32 %v1971_v17, %v1160_v18  ;;  %v3698_v18 = vld [vmem:[#allocation43_spill] sm:$0xff] }
 0x3c0   : > { %v3260_v59 = vpop.eup %1982  ;;  %2002 = vpow2.f32 %v1091_v54  ;;  %v1723_v23 = vpack.c.bf16 %v1981_v63, %v1977_v40  ;;  %v1198_v37 = vadd.f32 %v1973_v50, %v1197_v13  ;;  %v1105_v10 = vmul.f32 1.442695, %v3687_v9 }
 0x3c1   : > { %v1985_v31 = vpop.eup %1984  ;;  %2004 = vpow2.f32 %v1093_v56  ;;  %v1162_v32 = vadd.f32 %v3244_v60, %v1161_v6  ;;  %v3688_v28 = vsub.f32 %v3625_v55, %v2982_v1  ;;  %v3689_v58 = vsub.f32 %v3626_v39, %v2985_v19  ;;  %1722 = vmatpush1.bf16.msra.mxu1 %v1721_v52  ;;  %v3694_v52 = vld [vmem:[#allocation41_spill] sm:$0xff] }
 0x3c2   : > { %v1987_v8 = vpop.eup %1986  ;;  %2006 = vpow2.f32 %v1095_v44  ;;  %v1199_v34 = vadd.f32 %v1977_v40, %v1198_v37  ;;  %v3691_v33 = vsub.f32 %v3690_v57, %v2982_v1  ;;  %1724 = vmatprep.subr.bf16.mxu1 %v1723_v23  ;;  %v3693_v54 = vsub.f32 %v3692_v38, %v2985_v19  ;;  %v3696_v44 = vld [vmem:[#allocation42_spill] sm:$0xff]  ;;  %v3700_v23 = vld [vmem:[#allocation44_spill] sm:$0xff] }
 0x3c3   : > { %v1989_v15 = vpop.eup %1988  ;;  %2008 = vpow2.f32 %v1097_v16  ;;  %v1729_v21 = vpack.c.bf16 %v1987_v8, %v3260_v59  ;;  %v1107_v29 = vmul.f32 1.442695, %v3688_v28  ;;  %v1109_v51 = vmul.f32 1.442695, %v3689_v58 }
 0x3c4   : > { %v3276_v48 = vpop.eup %1990  ;;  %2010 = vpow2.f32 %v1099_v7  ;;  %v1727_v17 = vpack.c.bf16 %v1989_v15, %v1985_v31  ;;  %v1163_v36 = vadd.f32 %v1979_v22, %v1162_v32  ;;  %v1111_v61 = vmul.f32 1.442695, %v3691_v33 }
 0x3c5   : > { %v1993_v14 = vpop.eup %1992  ;;  %2012 = vpow2.f32 %v1101_v11  ;;  %v1200_v60 = vadd.f32 %v1981_v63, %v1199_v34  ;;  %v1113_v27 = vmul.f32 1.442695, %v3693_v54  ;;  %v3695_v20 = vsub.f32 %v3694_v52, %v2982_v1  ;;  %1726 = vmatpush1.bf16.msra.mxu1 %v1725_v3  ;;  %v3702_v3 = vld [vmem:[#allocation45_spill] sm:$0xff]  ;;  %v3706_v34 = vld [vmem:[#allocation47_spill] sm:$0xff]  ;;  %v3712_v52 = vld [vmem:[#allocation50_spill] sm:$0xff] }
 0x3c6   : > { %v1995_v50 = vpop.eup %1994  ;;  %2014 = vpow2.f32 %v1103_v46  ;;  %v1164_v62 = vadd.f32 %v3260_v59, %v1163_v36  ;;  %v3697_v24 = vsub.f32 %v3696_v44, %v2985_v19  ;;  %v3699_v59 = vsub.f32 %v3698_v18, %v2982_v1  ;;  %1728 = vmatprep.subr.bf16.mxu1 %v1727_v17 }
 0x3c7   : > { %v1997_v55 = vpop.eup %1996  ;;  %2016 = vpow2.f32 %v1105_v10  ;;  %v1733_v39 = vpack.c.bf16 %v1995_v50, %v3276_v48  ;;  %v1115_v56 = vmul.f32 1.442695, %v3695_v20  ;;  %v1201_v0 = vadd.f32 %v1985_v31, %v1200_v60  ;;  %v3704_v10 = vld [vmem:[#allocation46_spill] sm:$0xff] }
 0x3c8   : > { %v3292_v40 = vpop.eup %1998  ;;  %2018 = vpow2.f32 %v1107_v29  ;;  %v1731_v22 = vpack.c.bf16 %v1997_v55, %v1993_v14  ;;  %v1117_v63 = vmul.f32 1.442695, %v3697_v24  ;;  %v1165_v4 = vadd.f32 %v1987_v8, %v1164_v62 }
 0x3c9   : > { %v2001_v42 = vpop.eup %2000  ;;  %2020 = vpow2.f32 %v1109_v51  ;;  %v1119_v2 = vmul.f32 1.442695, %v3699_v59  ;;  %v1202_v7 = vadd.f32 %v1989_v15, %v1201_v0  ;;  %v3701_v31 = vsub.f32 %v3700_v23, %v2985_v19  ;;  %1730 = vmatpush1.bf16.msra.mxu1 %v1729_v21  ;;  %v3710_v21 = vld [vmem:[#allocation49_spill] sm:$0xff] }
 0x3ca   : > { %v2003_v16 = vpop.eup %2002  ;;  %2022 = vpow2.f32 %v1111_v61  ;;  %v1166_v11 = vadd.f32 %v3276_v48, %v1165_v4  ;;  %v3703_v30 = vsub.f32 %v3702_v3, %v2982_v1  ;;  %v3705_v32 = vsub.f32 %v3704_v10, %v2985_v19  ;;  %1732 = vmatprep.subr.bf16.mxu1 %v1731_v22 }
 0x3cb   : > { %v2005_v13 = vpop.eup %2004  ;;  %2024 = vpow2.f32 %v1113_v27  ;;  %v1121_v26 = vmul.f32 1.442695, %v3701_v31  ;;  %v1737_v6 = vpack.c.bf16 %v2003_v16, %v3292_v40  ;;  %v1203_v37 = vadd.f32 %v1993_v14, %v1202_v7  ;;  %v3708_v14 = vld [vmem:[#allocation48_spill] sm:$0xff] }
 0x3cc   : > { %v3308_v8 = vpop.eup %2006  ;;  %2026 = vpow2.f32 %v1115_v56  ;;  %v1123_v46 = vmul.f32 1.442695, %v3703_v30  ;;  %v1735_v15 = vpack.c.bf16 %v2005_v13, %v2001_v42  ;;  %v1125_v28 = vmul.f32 1.442695, %v3705_v32 }
 0x3cd   : > { %v2009_v9 = vpop.eup %2008  ;;  %2028 = vpow2.f32 %v1117_v63  ;;  %v1167_v29 = vadd.f32 %v1995_v50, %v1166_v11  ;;  %v3707_v17 = vsub.f32 %v3706_v34, %v2982_v1  ;;  %v1204_v51 = vadd.f32 %v1997_v55, %v1203_v37  ;;  %1734 = vmatpush1.bf16.msra.mxu1 %v1733_v39 }
 0x3ce   : > { %v2011_v48 = vpop.eup %2010  ;;  %2030 = vpow2.f32 %v1119_v2  ;;  %v3709_v57 = vsub.f32 %v3708_v14, %v2985_v19  ;;  %v3711_v38 = vsub.f32 %v3710_v21, %v2982_v1  ;;  %v3713_v20 = vsub.f32 %v3712_v52, %v2985_v19  ;;  %1736 = vmatprep.subr.bf16.mxu1 %v1735_v15 }
 0x3cf   : > { %v1127_v58 = vmul.f32 1.442695, %v3707_v17  ;;  %v2013_v36 = vpop.eup %2012  ;;  %2032 = vpow2.f32 %v1121_v26  ;;  %v1168_v61 = vadd.f32 %v3292_v40, %v1167_v29  ;;  %v1741_v60 = vpack.c.bf16 %v2011_v48, %v3308_v8  ;;  %v3723_v17 = vld [vmem:[#allocation58_spill] sm:$0xff] }
 0x3d0   : > { %v1129_v33 = vmul.f32 1.442695, %v3709_v57  ;;  %v3324_v50 = vpop.eup %2014  ;;  %2034 = vpow2.f32 %v1123_v46  ;;  %v1131_v54 = vmul.f32 1.442695, %v3711_v38  ;;  %v1205_v27 = vadd.f32 %v2001_v42, %v1204_v51  ;;  %v3715_v42 = vld [vmem:[#allocation52_spill] sm:$0xff] }
 0x3d1   : > { %v1739_v55 = vpack.c.bf16 %v2013_v36, %v2009_v9  ;;  %v2017_v62 = vpop.eup %2016  ;;  %2036 = vpow2.f32 %v1125_v28  ;;  %v1133_v56 = vmul.f32 1.442695, %v3713_v20  ;;  %v1169_v0 = vadd.f32 %v2003_v16, %v1168_v61  ;;  %1738 = vmatpush1.bf16.msra.mxu1 %v1737_v6 }
 0x3d2   : > { %v2019_v40 = vpop.eup %2018  ;;  %2038 = vpow2.f32 %v1127_v58  ;;  %v3714_v22 = vsub.f32 %v3639_v35, %v2982_v1  ;;  %v1206_v24 = vadd.f32 %v2005_v13, %v1205_v27  ;;  %v3716_v4 = vsub.f32 %v3715_v42, %v2985_v19 }
 0x3d3   : > { %v2021_v63 = vpop.eup %2020  ;;  %2040 = vpow2.f32 %v1129_v33  ;;  %v1170_v59 = vadd.f32 %v3308_v8, %v1169_v0  ;;  %v1745_v2 = vpack.c.bf16 %v2019_v40, %v3324_v50  ;;  %v3717_v39 = vsub.f32 %v3641_v47, %v2982_v1  ;;  %v3719_v8 = vld [vmem:[#allocation55_spill] sm:$0xff]  ;;  %1740 = vmatprep.subr.bf16.mxu1 %v1739_v55 }
 0x3d4   : > { %v1135_v44 = vmul.f32 1.442695, %v3714_v22  ;;  %v1137_v18 = vmul.f32 1.442695, %v3716_v4  ;;  %v2023_v16 = vpop.eup %2022  ;;  %2042 = vpow2.f32 %v1131_v54  ;;  %v1207_v35 = vadd.f32 %v2009_v9, %v1206_v24 }
 0x3d5   : > { %v1139_v7 = vmul.f32 1.442695, %v3717_v39  ;;  %v1743_v23 = vpack.c.bf16 %v2021_v63, %v2017_v62  ;;  %v2025_v13 = vpop.eup %2024  ;;  %2044 = vpow2.f32 %v1133_v56  ;;  %v3718_v31 = vsub.f32 %v3642_v5, %v2985_v19  ;;  %1742 = vmatpush1.bf16.msra.mxu1 %v1741_v60 }
 0x3d6   : > { %v1171_v11 = vadd.f32 %v2011_v48, %v1170_v59  ;;  %v2027_v3 = vpop.eup %2026  ;;  %2046 = vpow2.f32 %v1135_v44  ;;  %v3720_v30 = vsub.f32 %v3719_v8, %v2982_v1  ;;  %v1208_v37 = vadd.f32 %v2013_v36, %v1207_v35 }
 0x3d7   : > { %v1141_v26 = vmul.f32 1.442695, %v3718_v31  ;;  %v2029_v47 = vpop.eup %2028  ;;  %2048 = vpow2.f32 %v1137_v18  ;;  %v3721_v15 = vsub.f32 %v3644_v53, %v2985_v19  ;;  %v1749_v5 = vpack.c.bf16 %v2027_v3, %v2023_v16  ;;  %1744 = vmatprep.subr.bf16.mxu1 %v1743_v23 }
 0x3d8   : > { %v1143_v46 = vmul.f32 1.442695, %v3720_v30  ;;  %v1172_v10 = vadd.f32 %v3324_v50, %v1171_v11  ;;  %v2031_v32 = vpop.eup %2030  ;;  %2050 = vpow2.f32 %v1139_v7  ;;  %v3722_v6 = vsub.f32 %v3645_v49, %v2982_v1 }
 0x3d9   : > { %v1145_v9 = vmul.f32 1.442695, %v3721_v15  ;;  %v1209_v29 = vadd.f32 %v2017_v62, %v1208_v37  ;;  %v1747_v48 = vpack.c.bf16 %v2029_v47, %v2025_v13  ;;  %v2033_v34 = vpop.eup %2032  ;;  %2052 = vpow2.f32 %v1141_v26  ;;  %1746 = vmatpush1.bf16.msra.mxu1 %v1745_v2 }
 0x3da   : > { %v1147_v28 = vmul.f32 1.442695, %v3722_v6  ;;  %v3724_v58 = vsub.f32 %v3723_v17, %v2985_v19  ;;  %v1173_v36 = vadd.f32 %v2019_v40, %v1172_v10  ;;  %v2035_v53 = vpop.eup %2034  ;;  %2054 = vpow2.f32 %v1143_v46  ;;  %v2064_v17 = vld [vmem:[%s2688_s19 + $0x10] sm:$0xff] }
 0x3db   : > { %v1210_v14 = vadd.f32 %v2021_v63, %v1209_v29  ;;  %v2037_v57 = vpop.eup %2036  ;;  %2056 = vpow2.f32 %v1145_v9  ;;  %v1753_v61 = vpack.c.bf16 %v2035_v53, %v2031_v32  ;;  %1748 = vmatprep.subr.bf16.mxu1 %v1747_v48 }
 0x3dc   : > { %v1149_v51 = vmul.f32 1.442695, %v3724_v58  ;;  %v1174_v33 = vadd.f32 %v2023_v16, %v1173_v36  ;;  %v2039_v1 = vpop.eup %2038  ;;  %2058 = vpow2.f32 %v1147_v28  ;;  %v1751_v50 = vpack.c.bf16 %v2037_v57, %v2033_v34  ;;  %v2063_v28 = vld [vmem:[%s2688_s19 + $0x18] sm:$0xff] }
 0x3dd   : > { %v1211_v49 = vadd.f32 %v2025_v13, %v1210_v14  ;;  %v2041_v21 = vpop.eup %2040  ;;  %1750 = vmatpush1.bf16.msra.mxu1 %v1749_v5  ;;  %v3725_v14 = vld [vmem:[#allocation59_spill] sm:$0xff] }
 0x3de   : > { %2060 = vpow2.f32 %v1149_v51  ;;  %v1175_v38 = vadd.f32 %v2027_v3, %v1174_v33  ;;  %v2043_v19 = vpop.eup %2042  ;;  %1752 = vmatprep.subr.bf16.mxu1 %v1751_v50  ;;  %v1251_v50 = vld [vmem:[#allocation4] sm:$0xff] }
 0x3df   : > { %v1212_v54 = vadd.f32 %v2029_v47, %v1211_v49  ;;  %v2045_v60 = vpop.eup %2044  ;;  %v1757_v55 = vpack.c.bf16 %v2043_v19, %v2039_v1 }
 0x3e0   : > { %v1176_v27 = vadd.f32 %v2031_v32, %v1175_v38  ;;  %v2047_v62 = vpop.eup %2046  ;;  %v1755_v20 = vpack.c.bf16 %v2045_v60, %v2041_v21  ;;  %v2062_v32 = vld [vmem:[%s2688_s19] sm:$0xff]  ;;  %v1266_v38 = vmul.f32 %v3214_v45, %v1251_v50 }
 0x3e1   : > { %v1213_v52 = vadd.f32 %v2033_v34, %v1212_v54  ;;  %v2049_v56 = vpop.eup %2048  ;;  %1754 = vmatpush1.bf16.msra.mxu1 %v1753_v61 }
 0x3e2   : > { %v1177_v0 = vadd.f32 %v2035_v53, %v1176_v27  ;;  %v2051_v40 = vpop.eup %2050  ;;  %1756 = vmatprep.subr.bf16.mxu1 %v1755_v20  ;;  %v1151_v53 = vld [vmem:[#allocation3] sm:$0x3] }
 0x3e3   : > { %v1214_v22 = vadd.f32 %v2037_v57, %v1213_v52  ;;  %v2053_v44 = vpop.eup %2052  ;;  %v1761_v63 = vpack.c.bf16 %v2051_v40, %v2047_v62  ;;  %v1152_v33 = vmul.f32 %v3156_v41, %v1151_v53 }
 0x3e4   : > { %v1178_v24 = vadd.f32 %v2039_v1, %v1177_v0  ;;  %v2055_v42 = vpop.eup %2054  ;;  %v1759_v18 = vpack.c.bf16 %v2053_v44, %v2049_v56 }
 0x3e5   : > { %v1215_v4 = vadd.f32 %v2041_v21, %v1214_v22  ;;  %v2057_v59 = vpop.eup %2056  ;;  %1758 = vmatpush1.bf16.msra.mxu1 %v1757_v55  ;;  %v1252_v21 = vld [vmem:[#allocation4 + $0x8] sm:$0xff] }
 0x3e6   : > { %v1179_v2 = vadd.f32 %v2043_v19, %v1178_v24  ;;  %v2059_v16 = vpop.eup %2058  ;;  %1760 = vmatprep.subr.bf16.mxu1 %v1759_v18  ;;  %v1267_v54 = vmul.f32 %v3218_v12, %v1252_v21  ;;  %v2348_v24 = vmov (!%p1686_p10), 0.0  }
 0x3e7   : > { %v1216_v39 = vadd.f32 %v2045_v60, %v1215_v4  ;;  %v1765_v23 = vpack.c.bf16 %v2059_v16, %v2055_v42  ;;  %v1253_v60 = vld [vmem:[#allocation4 + $0x10] sm:$0xff]  ;;  %1457 = vmatprep.mubr.f32.mxu0 (!%p1686_p10), %v2348_v24 }
 0x3e8   : > { %v2061_v7 = vpop.eup %2060  ;;  %v1180_v35 = vadd.f32 %v2047_v62, %v1179_v2  ;;  %v1254_v62 = vld [vmem:[#allocation4 + $0x18] sm:$0xff]  ;;  %v1268_v41 = vmul.f32 %v3214_v45, %v1253_v60 }
 0x3e9   : > { %v1217_v13 = vadd.f32 %v2049_v56, %v1216_v39  ;;  %v1763_v31 = vpack.c.bf16 %v2061_v7, %v2057_v59  ;;  %1762 = vmatpush1.bf16.msra.mxu1 %v1761_v63  ;;  %v1269_v56 = vmul.f32 %v3218_v12, %v1254_v62 }
 0x3ea   : > { %v1181_v26 = vadd.f32 %v2051_v40, %v1180_v35 }
 0x3eb   : > { %v1218_v11 = vadd.f32 %v2053_v44, %v1217_v13  ;;  %1764 = vmatprep.subr.bf16.mxu1 %v1763_v31  ;;  %v1362_v13 = vld [vmem:[#allocation12] sm:$0xff] (!%p1686_p10)  ;;  %v1363_v31 = vld [vmem:[#allocation12 + $0x8] sm:$0xff] (!%p1686_p10) }
 0x3ec   : > { %v1182_v3 = vadd.f32 %v2055_v42, %v1181_v26  ;;  %v1384_v26 = vld [vmem:[%s2680_s3 + $0x8] sm:$0xff] (!%p1686_p10) }
 0x3ed   : > { %v1219_v8 = vadd.f32 %v2057_v59, %v1218_v11  ;;  %1766 = vmatpush1.bf16.msra.mxu1 %v1765_v23  ;;  %v1386_v11 = vld [vmem:[%s2680_s3 + $0x18] sm:$0xff] (!%p1686_p10) }
 0x3ee   : > { %v1183_v30 = vadd.f32 %v2059_v16, %v1182_v3 }
 0x3ef   : > { %v1220_v46 = vadd.f32 %v2061_v7, %v1219_v8 }
 0x3f0   : > { %v1184_v37 = vrot.slane %v1183_v30, 4  ;;  %1335 = vmatmul.mubr.f32.vlgmr.msra.gmra.mrb[0].mxu1 %v2062_v32 }
 0x3f1   : > { %v1221_v47 = vrot.slane %v1220_v46, 4  ;;  %1340 = vmatprep.mubr.f32.mxu1 %v2063_v28 }
 0x3f2   : > { %v1185_v15 = vadd.f32 %v1184_v37, %v1183_v30 }
 0x3f3   : > { %v1222_v9 = vadd.f32 %v1221_v47, %v1220_v46 }
 0x3f4   : > { %v1186_v10 = vrot.slane %v1185_v15, 2  ;;  %1341 = vmatmul.mubr.f32.gmra.mrb[2].mxu1 %v2064_v17 }
 0x3f5   : > { %v1223_v5 = vrot.slane %v1222_v9, 2  ;;  %1463 = vmatprep.mubr.f32.mxu1 (!%p1686_p10), %v2348_v24 }
 0x3f6   : > { %v1187_v6 = vadd.f32 %v1186_v10, %v1185_v15 }
 0x3f7   : > { %v1224_v29 = vadd.f32 %v1223_v5, %v1222_v9 }
 0x3f8   : > { %v1188_v48 = vrot.slane %v1187_v6, 1 }
 0x3f9   : > { %v1225_v34 = vrot.slane %v1224_v29, 1 }
 0x3fa   : > { %v1189_v58 = vadd.f32 %v1188_v48, %v1187_v6 }
 0x3fb   : > { %v1226_v51 = vadd.f32 %v1225_v34, %v1224_v29 }
 0x3fd   : > { %v1229_v36 = vcombine.low %v1189_v58, %v1226_v51 }
 0x3ff   : > { %v1236_v57 = vrot.slane %v1229_v36, %v3725_v14 }
 0x401   : > { %v1243_v61 = vrot.slane %v1236_v57, %v3725_v14 }
 0x403   : > { %v1245_v1 = vadd.f32 %v1243_v61, %v1152_v33 }
 0x405   : > { %1250 = vst.msk [vmem:[#allocation3] sm:$0x3] %vm2977_vm3, %v1245_v1 }
 0x40c   : > { %v1360_v44 = vld [vmem:[#allocation3] sm:$0x3] (!%p1686_p10) }
 0x40d   : > { %2065 = vrcp.f32 (!%p1686_p10), %v1360_v44 }
 0x417   : > { %v2066_v42 = vpop.eup (!%p1686_p10), %2065 }
 0x418   : > { %v1376_v12 = vrot.slane (!%p1686_p10), %v2066_v42, %v2975_v25  ;;  %v1372_v59 = vrot.slane (!%p1686_p10), %v2066_v42, %v2973_v43  ;;  %v1383_v43 = vld [vmem:[%s2680_s3] sm:$0xff] (!%p1686_p10)  ;;  %v1385_v25 = vld [vmem:[%s2680_s3 + $0x10] sm:$0xff] (!%p1686_p10) }
 0x4c3   : > { %v1336_v19 = vpop.f32.mrb[0].mxu1 }
 0x4c4   : > { %v1347_v27 = vadd.f32 %v1336_v19, %v1266_v38  ;;  %v1338_v55 = vpop.f32.mrb[1].mxu1 }
 0x4c5   : > { %v1348_v52 = vadd.f32 %v1338_v55, %v1267_v54  ;;  %1359 = sbr.rel (%p1686_p10) target bundleno = 1459 (0x5b3), region = 60 }
 0x4c6   : > { %1351 = vst [vmem:[#allocation4] sm:$0xff] %v1347_v27 }
 0x4c7   : > { %1352 = vst [vmem:[#allocation4 + $0x8] sm:$0xff] %v1348_v52  ;;  %v1342_v20 = vpop.f32.mrb[2].mxu1 }
 0x4c8   : > { %v1349_v0 = vadd.f32 %v1342_v20, %v1268_v41  ;;  %v1344_v40 = vpop.f32.mrb[3].mxu1 }
 0x4c9   : > { %v1350_v22 = vadd.f32 %v1344_v40, %v1269_v56 }
 0x4ca   : > { %1353 = vst [vmem:[#allocation4 + $0x10] sm:$0xff] %v1349_v0 }
 0x4cb   : > { %1354 = vst [vmem:[#allocation4 + $0x18] sm:$0xff] %v1350_v22 }
 0x4cd   : > { %v1364_v4 = vld [vmem:[#allocation4] sm:$0xff] }
 0x4ce   : > { %v1365_v63 = vld [vmem:[#allocation4 + $0x8] sm:$0xff]  ;;  %v1379_v39 = vmul.f32 %v1372_v59, %v1364_v4 }
 0x4cf   : > { %v1380_v2 = vmul.f32 %v1376_v12, %v1365_v63 }
 0x4d1   : > { %v1366_v18 = vld [vmem:[#allocation4 + $0x10] sm:$0xff] }
 0x4d2   : > { %v1367_v45 = vld [vmem:[#allocation4 + $0x18] sm:$0xff]  ;;  %v1381_v7 = vmul.f32 %v1372_v59, %v1366_v18 }
 0x4d3   : > { %v1382_v16 = vmul.f32 %v1376_v12, %v1367_v45 }
 0x4d4   : > { %v1769_v23 = vpack.c.bf16 %v1381_v7, %v1379_v39 }
 0x4d5   : > { %v1767_v35 = vpack.c.bf16 %v1382_v16, %v1380_v2 }
 0x4d7   : > { %1768 = vmatprep.subr.bf16.mxu0 %v1767_v35  ;;  %1773 = vmatprep.subr.bf16.mxu1 %v1767_v35 }
 0x4d8   : > { %1770 = vmatpush1.bf16.msra.mxu0 %v1769_v23  ;;  %1774 = vmatpush1.bf16.msra.mxu1 %v1769_v23 }
 0x4db   : > { %1687 = vmatmul.mubr.msk.f32.vlgmr.msra.gmra.mrb[0].mxu0 %vm497_vm2, %v1362_v13  ;;  %1688 = vmatmul.mubr.msk.f32.vlgmr.msra.gmra.mrb[0].mxu1 %vm497_vm2, %v1363_v31 }
 0x5ae   : > { %v1459_v3 = vpop.f32.mrb[0].mxu0  ;;  %v1465_v8 = vpop.f32.mrb[0].mxu1 }
 0x5af   : > { %v1460_v30 = vadd.f32 %v1459_v3, %v1383_v43  ;;  %v1466_v46 = vadd.f32 %v1465_v8, %v1385_v25  ;;  %v1461_v37 = vpop.f32.mrb[1].mxu0  ;;  %v1467_v47 = vpop.f32.mrb[1].mxu1 }
 0x5b0   : > { %v1462_v15 = vadd.f32 %v1461_v37, %v1384_v26  ;;  %v1468_v9 = vadd.f32 %v1467_v47, %v1386_v11 }
 0x5b1   : > { %1470 = vst [vmem:[%s2702_s29] sm:$0xff] %v1460_v30  ;;  %1472 = vst [vmem:[%s2702_s29 + $0x10] sm:$0xff] %v1466_v46 }
 0x5b2   : > { %1471 = vst [vmem:[%s2702_s29 + $0x8] sm:$0xff] %v1462_v15  ;;  %1473 = vst [vmem:[%s2702_s29 + $0x18] sm:$0xff] %v1468_v9 }
 0x5b3 PF: > { %s3728_s21 = sld [smem:[#allocation24_spill]]  ;;  %s3729_s30 = sld [smem:[#allocation25_spill]] }
 0x5b4   : > { %s1490_s13 = sshll.u32 %s2702_s29, 4  ;;  %s3731_s9 = sld [smem:[#allocation63_spill]]  ;;  %s3387_s13 = int_to_ptr.vmem [resolvable:$true] %s1490_s13 }
 0x5b5   : > { %s1475_s8 = scalar_lea.sflag [#allocation8], %s2676_s2  ;;  %s2183_s18 = scalar_lea.vmem %s3387_s13, 512 }
 0x5b6   : > { %p2184_p6 = scmp.ne.s32.totalorder %s3387_s13, %s2183_s18  ;;  %s2349_s14 = smov [#allocation14]  }
 0x5b7   : > { %s2187_s15 = sshll.u32 %s2349_s14, 4  ;;  %s2188_s15 = int_to_ptr.vmem [resolvable:$false] %s2187_s15 }
 0x5b8   : > { %p2185_p13 = pnand %p2184_p6, %p2560_p8  ;;  %s2189_s19 = scalar_lea.vmem %s2188_s15, 1024 }
 0x5b9   : > { %s1690_s11 = sshll.u32 %s3728_s21, 1  ;;  %s1691_s7 = sshll.u32 %s3729_s30, 3 }
 0x5ba   : > { %s1487_s22 = sadd.s32 %s1691_s7, %s1690_s11  ;;  %p2186_p1 = pneg %p2185_p13 }
 0x5bb   : > { %s1692_s10 = sshll.u32 %s1487_s22, 7  ;;  %p2190_p9 = scmp.lt.s32.totalorder %s3387_s13, %s2188_s15 }
 0x5bc   : > { %s3392_s5 = scalar_lea.hbm %s3731_s9, %s1692_s10  ;;  %p2191_p0 = scmp.lt.s32.totalorder %s2189_s19, %s2183_s18 }
 0x5be   : > { %p2192_p12 = por %p2191_p0, %p2190_p9 }
 0x5c0   : > { %p2193_p7 = pnand %p2192_p12, %p2186_p1 }
 0x5c2   : > { %2196 = shalt.err (!%p2193_p7)
}
 0x5c3   : > { %s2197_s29 = scalar_lea.hbm %s3392_s5, 512  ;;  %s2201_s21 = scalar_lea.hbm %s3731_s9, 2048 }
 0x5c4   : > { %p2198_p3 = scmp.ne.s32.totalorder %s3392_s5, %s2197_s29  ;;  %p2202_p5 = scmp.lt.u32.totalorder %s3392_s5, %s3731_s9 }
 0x5c5   : > { %p2203_p4 = scmp.lt.u32.totalorder %s2201_s21, %s2197_s29  ;;  %p2205_p6 = scmp.lt.u32.totalorder %s2197_s29, %s3392_s5 }
 0x5c6   : > { %p2199_p11 = pnand %p2198_p3, %p2560_p8 }
 0x5c7   : > { %p2204_p10 = por %p2203_p4, %p2202_p5 }
 0x5c8   : > { %p2200_p2 = pneg %p2199_p11 }
 0x5c9   : > { %p2206_p13 = por %p2205_p6, %p2204_p10 }
 0x5cb   : > { %p2207_p1 = pnand %p2206_p13, %p2200_p2 }
 0x5cd   : > { %2210 = shalt.err (!%p2207_p1)
}
 0x5ce   : > { %s2350_s7 = smov 256   ;;  %s2351_s22 = smov 512  }
 0x5cf   : > { %s2352_s10 = smov 16  }
 0x5d0   : > { %1787 = dma.vmem_to_hbm [thread:$0]  (%p2560_p8), %s3387_s13, 512, %s3392_s5, %s1475_s8, %s2350_s7, %s2351_s22, %s2352_s10  }
 0x5d1 PF: > { %s3732_s3 = sld [smem:[#allocation21_spill]]  ;;  %s3733_s12 = sld [smem:[#allocation30_spill]] }
 0x5d2   : > { %p1812_p9 = scmp.ge.s32.totalorder %s2333_s27, 2 }
 0x5d7   : > { %s1505_s18 = sand.u32 1, %s3732_s3   ;;  %p3734_p0 = scmp.ne.s32.totalorder %s3733_s12, 0 }
 0x5d8   : > { %s1506_s14 = scalar_lea.sflag [#allocation8], %s1505_s18 }
 0x5d9   : > { %p1804_p12 = pnand %p1812_p9, %p3734_p0 }
 0x5db   : > { %2280 = dma.done.wait (!%p1804_p12), %s1506_s14, 512  }
 0x5dc   : > { %2282 = vsyncadd (!%p1804_p12), %s1506_s14, 4294966784  ;;  %s24_s27 = sadd.s32 1, %s2333_s27   ;;  %s3736_s23 = sld [smem:[#allocation20_spill]] }
 0x5dd   : > { %p3423_p7 = scmp.ge.s32.totalorder %s24_s27, 10   ;;  %s3737_s18 = sld [smem:[#allocation22_spill]] }
 0x5de   : > { %s3738_s2 = smov %s2581_s16  ;;  %s3739_s22 = sld [smem:[#allocation26_spill]] }
 0x5df   : > { %s3740_s13 = sld [smem:[#allocation31_spill]]  ;;  %s3741_s5 = sld [smem:[#allocation33_spill]] }
 0x5e0   : > { %s3744_s16 = smov %s2293_s17  ;;  %s3745_s17 = smov %s2584_s25 }
 0x5e1   : > { %s3746_s19 = smov %s2305_s20  ;;  %s3747_s20 = smov %s3738_s2 }
 0x5e2   : > { %s3743_s15 = smov %s3736_s23  ;;  %s3748_s21 = smov %s2321_s24 }
 0x5e3   : > { %s3749_s23 = smov %s2329_s26  ;;  %s3752_s26 = smov %s3762_s6 }
 0x5e4   :  { %23 = sbr.rel (!%p3423_p7) target bundleno = 17 (0x11), region = 110 }
 0x5e5   : > { %s3750_s24 = smov %s3740_s13  ;;  %s3751_s25 = smov %s3741_s5 }
 0x5eb   :  { %1511 = vsyncpa [#allocation7], 1 }
 0x5ec   :  { %1513 = vsyncpa [#allocation7 + $0x1], 1 }
 0x5ed   :  { %1514 = vsyncpa [#allocation10], 1 }
 0x5ee   :  { %1516 = vsyncpa [#allocation10 + $0x1], 1 }
 0x5ef   :  { %1517 = vsyncpa [#allocation13], 1 }
 0x5f0   :  { %1518 = vsyncpa [#allocation8], 1 }
 0x5f1   :  { %1520 = vsyncpa [#allocation8 + $0x1], 1 }

</bundles_post_ra>
